<compile_context>
chip_gen: v6e
topology: v6e:2x2x1
jax: 0.10.0
libtpu: 0.0.40
codegen_flags: <defaults>
</compile_context>

<pallas_src>
import functools

import jax
import jax.numpy as jnp
from jax.experimental import pallas as pl
from jax.experimental.pallas import tpu as pltpu

LANE = 128           # lane-padded feature width of every layer
MHA_LAYER = 3        # position of the folded attention layer in the stack
NUM_LAYERS = 8       # conv1..3, mha, conv4..7
F1, F2, F3, BN = 64, 32, 32, 1
EMBED = F3


def _round_up(x, m):
    return ((x + m - 1) // m) * m


def _vmem_cap_bytes():
    try:
        cap = pltpu.get_tpu_info().vmem_capacity_bytes
        if cap:
            return int(cap)
    except Exception:
        pass
    return 64 << 20    # conservative: v7x has the smallest physical VMEM / TC


def _full_spec(shape):
    """Grid-invariant whole-array block; single-buffered (nothing to pipeline)."""
    return pl.BlockSpec(shape, lambda *_: (0,) * len(shape),
                        pipeline_mode=pl.Buffered(1))


# ----------------------------------------------------------------------------
# Fused single-call path: A_hat VMEM-resident, all 8 layers in one kernel.
# ----------------------------------------------------------------------------
def _fused_forward_kernel(a_ref, x_ref, w_ref, b_ref, o_ref):
    a = a_ref[...]                      # [Np, Np]   bf16 normalized adjacency
    h = x_ref[...]                      # [Np, 128]  bf16 lane-padded activations
    act = None
    for layer in range(NUM_LAYERS):     # static Python unroll over the 8 layers
        hw = jnp.dot(h, w_ref[layer], preferred_element_type=jnp.float32)
        if layer == MHA_LAYER:
            # degenerate 1-head MHA (length-1 softmax == 1): pure affine map.
            act = hw + b_ref[layer]
        else:
            ah = jnp.dot(a, hw.astype(jnp.bfloat16),
                         preferred_element_type=jnp.float32)
            act = jnp.maximum(ah + b_ref[layer], 0.0)
        h = act.astype(jnp.bfloat16)    # bf16 feed for the next MXU pass
    o_ref[...] = act.astype(o_ref.dtype)


def _forward_fused(a_pad, x_pad, fused_w, fused_b, n_pad):
    work = (2 * n_pad * n_pad                      # A_hat (bf16, single buffer)
            + n_pad * LANE * (2 + 4)               # x (bf16) + out (f32)
            + fused_w.size * 2 + fused_b.size * 4
            + 6 * n_pad * LANE * 4)                # in-kernel f32/bf16 temps
    vmem_limit = int(min(_vmem_cap_bytes() - (2 << 20),
                         max(32 << 20, work + (8 << 20))))
    cost = pl.CostEstimate(
        flops=int((NUM_LAYERS - 1) * 2 * n_pad * n_pad * LANE
                  + NUM_LAYERS * 2 * n_pad * LANE * LANE),
        transcendentals=0,
        bytes_accessed=int(work))
    return pl.pallas_call(
        _fused_forward_kernel,
        out_shape=jax.ShapeDtypeStruct((n_pad, LANE), jnp.float32),
        grid=(1,),
        in_specs=[_full_spec(a_pad.shape), _full_spec(x_pad.shape),
                  _full_spec(fused_w.shape), _full_spec(fused_b.shape)],
        out_specs=_full_spec((n_pad, LANE)),
        compiler_params=pltpu.CompilerParams(
            dimension_semantics=("arbitrary",),
            vmem_limit_bytes=vmem_limit),
        cost_estimate=cost,
    )(a_pad, x_pad, fused_w, fused_b)


# ----------------------------------------------------------------------------
# Row-tiled per-layer path for large graphs (A_hat streamed in row blocks,
# "parallel" grid axis -> v7x megacore sharding; h stays whole in VMEM).
# ----------------------------------------------------------------------------
def _xw_kernel(h_ref, w_ref, o_ref):
    o_ref[...] = jnp.dot(h_ref[...], w_ref[...],
                         preferred_element_type=jnp.float32).astype(o_ref.dtype)


def _affine_kernel(h_ref, w_ref, b_ref, o_ref):
    hw = jnp.dot(h_ref[...], w_ref[...], preferred_element_type=jnp.float32)
    o_ref[...] = (hw + b_ref[...]).astype(o_ref.dtype)


def _agg_bias_relu_kernel(a_ref, hw_ref, b_ref, o_ref):
    ah = jnp.dot(a_ref[...], hw_ref[...], preferred_element_type=jnp.float32)
    o_ref[...] = jnp.maximum(ah + b_ref[...], 0.0).astype(o_ref.dtype)


def _row_tile(n_pad):
    for tm in (512, 256, 128):
        if n_pad % tm == 0:
            return tm
    return 128


def _forward_rowtiled(a_pad, x_pad, fused_w, fused_b, n_pad):
    tm = _row_tile(n_pad)
    ntiles = n_pad // tm
    cap = _vmem_cap_bytes()

    def _params(extra_bytes):
        limit = int(min(cap - (2 << 20), max(32 << 20, extra_bytes + (8 << 20))))
        return pltpu.CompilerParams(dimension_semantics=("parallel",),
                                    vmem_limit_bytes=limit)

    rows = lambda width: pl.BlockSpec((tm, width), lambda i: (i, 0))

    def xw(h, w):
        return pl.pallas_call(
            _xw_kernel,
            out_shape=jax.ShapeDtypeStruct((n_pad, LANE), jnp.bfloat16),
            grid=(ntiles,),
            in_specs=[rows(LANE), _full_spec((LANE, LANE))],
            out_specs=rows(LANE),
            compiler_params=_params(4 * tm * LANE * 4 + LANE * LANE * 2),
        )(h, w)

    def affine(h, w, b):
        return pl.pallas_call(
            _affine_kernel,
            out_shape=jax.ShapeDtypeStruct((n_pad, LANE), jnp.bfloat16),
            grid=(ntiles,),
            in_specs=[rows(LANE), _full_spec((LANE, LANE)), _full_spec((1, LANE))],
            out_specs=rows(LANE),
            compiler_params=_params(4 * tm * LANE * 4 + LANE * LANE * 2),
        )(h, w, b)

    def agg(hw, b, out_dtype):
        work = 2 * (tm * n_pad * 2) + n_pad * LANE * 2 + 4 * tm * LANE * 4
        cost = pl.CostEstimate(
            flops=int(2 * n_pad * n_pad * LANE),
            transcendentals=0,
            bytes_accessed=int(2 * n_pad * n_pad + 6 * n_pad * LANE))
        return pl.pallas_call(
            _agg_bias_relu_kernel,
            out_shape=jax.ShapeDtypeStruct((n_pad, LANE), out_dtype),
            grid=(ntiles,),
            in_specs=[pl.BlockSpec((tm, n_pad), lambda i: (i, 0)),
                      _full_spec((n_pad, LANE)), _full_spec((1, LANE))],
            out_specs=rows(LANE),
            compiler_params=_params(work),
            cost_estimate=cost,
        )(a_pad, hw, b)

    h = x_pad
    for layer in range(NUM_LAYERS):
        w = fused_w[layer]
        b = fused_b[layer]
        if layer == MHA_LAYER:
            h = affine(h, w, b)
        else:
            out_dtype = jnp.float32 if layer == NUM_LAYERS - 1 else jnp.bfloat16
            h = agg(xw(h, w), b, out_dtype)
    return h


# ----------------------------------------------------------------------------
# Public forward
# ----------------------------------------------------------------------------
@functools.partial(jax.jit, static_argnames=("force_rowtile",))
def gcn_cn_v4_ae_bn1_forward(a_hat, features, fused_w, fused_b,
                             force_rowtile=False):
    n, f = features.shape
    n_pad = _round_up(max(n, LANE), LANE)          # lane/sublane-dense padding

    # Pad + bf16-cast under jit so XLA fuses this glue around the custom call.
    # TODO(synk): when the same graph is reused across many calls, hoist the
    # A_hat pad/cast out of the per-call path (pad once on the host).
    a_pad = jnp.zeros((n_pad, n_pad), jnp.bfloat16).at[:n, :n].set(
        a_hat.astype(jnp.bfloat16))
    x_pad = jnp.zeros((n_pad, LANE), jnp.bfloat16).at[:n, :f].set(
        features.astype(jnp.bfloat16))

    # Whole-A_hat VMEM residency when it fits (preferred on v5e/v6e); otherwise
    # the row-tiled per-layer path (needed earliest on v7x's 64 MiB VMEM, and
    # its "parallel" row axis also engages the second TensorCore).
    fused_work = 2 * n_pad * n_pad + 10 * n_pad * LANE * 4 + (1 << 20)
    use_fused = (not force_rowtile) and (fused_work + (8 << 20)
                                         <= _vmem_cap_bytes())

    if use_fused:
        out = _forward_fused(a_pad, x_pad, fused_w, fused_b, n_pad)
    else:
        out = _forward_rowtiled(a_pad, x_pad, fused_w, fused_b, n_pad)

    # TODO(synk): for many small graphs, add a leading "parallel" grid axis over
    # a batch of padded (A, x) stacks instead of one pallas_call per graph.
    return out[:n, :f].astype(jnp.float32)


# ----------------------------------------------------------------------------
# Parameter setup (folds / transposes / padding hoisted out of forward)
# ----------------------------------------------------------------------------
def init_params(key, feature_dim_size):
    dims = [(feature_dim_size, F1), (F1, F2), (F2, F3), (F3, BN),
            (BN, F2), (F2, F1), (F1, feature_dim_size)]
    params = {}
    keys = jax.random.split(key, 2 * len(dims) + 4)
    ki = iter(keys)
    for li, (din, dout) in enumerate(dims, start=1):
        params[f"w{li}"] = 0.1 * jax.random.normal(next(ki), (din, dout), jnp.float32)
        params[f"b{li}"] = 0.1 * jax.random.normal(next(ki), (dout,), jnp.float32)
    e = EMBED
    params["attn_in_w"] = 0.1 * jax.random.normal(next(ki), (3 * e, e), jnp.float32)
    params["attn_in_b"] = 0.1 * jax.random.normal(next(ki), (3 * e,), jnp.float32)
    params["attn_out_w"] = 0.1 * jax.random.normal(next(ki), (e, e), jnp.float32)
    params["attn_out_b"] = 0.1 * jax.random.normal(next(ki), (e,), jnp.float32)
    return params


def prepare_fused_params(params):
    """Fold the degenerate MHA, zero-pad every layer to 128x128, cast to bf16."""
    e = EMBED
    # PyTorch MHA: value proj is x @ Wv^T + bv, output proj is y @ Wo^T + bo.
    wv = params["attn_in_w"][2 * e:3 * e]
    bv = params["attn_in_b"][2 * e:3 * e]
    wo = params["attn_out_w"]
    bo = params["attn_out_b"]
    w_vo = wv.T @ wo.T                     # (E, E)
    b_vo = bv @ wo.T + bo                  # (E,)

    def pad_w(w):
        din, dout = w.shape
        return jnp.zeros((LANE, LANE), jnp.float32).at[:din, :dout].set(w)

    def pad_b(b):
        return jnp.zeros((LANE,), jnp.float32).at[:b.shape[0]].set(b)

    ws = [params["w1"], params["w2"], params["w3"], w_vo,
          params["w4"], params["w5"], params["w6"], params["w7"]]
    bs = [params["b1"], params["b2"], params["b3"], b_vo,
          params["b4"], params["b5"], params["b6"], params["b7"]]
    w_stack = jnp.stack([pad_w(w) for w in ws]).astype(jnp.bfloat16)  # (8,128,128) bf16
    b_stack = jnp.stack([pad_b(b) for b in bs])[:, None, :]           # (8,1,128)  f32
    return w_stack, b_stack


def build_normalized_adjacency(key, n):
    a = (jax.random.uniform(key, (n, n)) < 0.3).astype(jnp.float32)
    a = jnp.maximum(a, a.T) * (1.0 - jnp.eye(n, dtype=jnp.float32))
    a_tilde = a + jnp.eye(n, dtype=jnp.float32)              # add self loops
    deg = jnp.sum(a_tilde, axis=1)
    d_inv_sqrt = 1.0 / jnp.sqrt(deg)
    return a_tilde * d_inv_sqrt[:, None] * d_inv_sqrt[None, :]


# ----------------------------------------------------------------------------
# Pure-JAX f32 reference (correctness check only)
# ----------------------------------------------------------------------------
def reference_forward(a_hat, x, params):
    def gcn(h, w, b):
        return jnp.maximum(a_hat @ (h @ w) + b, 0.0)

    e = EMBED
    h = gcn(x, params["w1"], params["b1"])
    h = gcn(h, params["w2"], params["b2"])
    h = gcn(h, params["w3"], params["b3"])
    wv = params["attn_in_w"][2 * e:3 * e]
    bv = params["attn_in_b"][2 * e:3 * e]
    v = h @ wv.T + bv                              # length-1 softmax == 1.0
    h = v @ params["attn_out_w"].T + params["attn_out_b"]
    h = gcn(h, params["w4"], params["b4"])
    h = gcn(h, params["w5"], params["b5"])
    h = gcn(h, params["w6"], params["b6"])
    h = gcn(h, params["w7"], params["b7"])
    return h


if __name__ == "__main__":
    feature_dim_size = 8
    num_nodes = 16
    key = jax.random.PRNGKey(0)
    k_adj, k_feat, k_par, k_adj2, k_feat2 = jax.random.split(key, 5)

    a_hat = build_normalized_adjacency(k_adj, num_nodes)                  # [16, 16]
    features = jax.random.normal(k_feat, (num_nodes, feature_dim_size),
                                 jnp.float32)                             # [16, 8]
    params = init_params(k_par, feature_dim_size)
    fused_w, fused_b = prepare_fused_params(params)

    # Fused single-kernel path (default).
    out = gcn_cn_v4_ae_bn1_forward(a_hat, features, fused_w, fused_b)
    jax.block_until_ready(out)
    assert out.shape == (num_nodes, feature_dim_size)

    ref = reference_forward(a_hat, features, params)
    err = float(jnp.max(jnp.abs(out - ref)))
    # bf16 operands + f32 accumulation -> loosened tolerance vs f32 reference.
    assert jnp.allclose(out, ref, rtol=2e-2, atol=2e-2), err

    # Exercise the large-graph row-tiled "parallel" path too (forced here).
    n2 = 300
    a2 = build_normalized_adjacency(k_adj2, n2)
    x2 = jax.random.normal(k_feat2, (n2, feature_dim_size), jnp.float32)
    out2 = gcn_cn_v4_ae_bn1_forward(a2, x2, fused_w, fused_b, force_rowtile=True)
    jax.block_until_ready(out2)
    ref2 = reference_forward(a2, x2, params)
    err2 = float(jnp.max(jnp.abs(out2 - ref2)))
    assert jnp.allclose(out2, ref2, rtol=2e-2, atol=2e-2), err2

    print("KERNEL_OK")
</pallas_src>

<mosaic_0001>
module attributes {stable_mosaic.version = 11 : i64} {
  func.func @_fused_forward_kernel(%arg0: i32, %arg1: memref<128x128xbf16, #tpu.memory_space<vmem>>, %arg2: memref<128x128xbf16, #tpu.memory_space<vmem>>, %arg3: memref<8x128x128xbf16, #tpu.memory_space<vmem>>, %arg4: memref<8x1x128xf32, #tpu.memory_space<vmem>>, %arg5: memref<128x128xf32, #tpu.memory_space<vmem>>) attributes {dimension_semantics = [#tpu.dimension_semantics<arbitrary>], iteration_bounds = array<i64: 1>, scalar_prefetch = 0 : i64, scratch_operands = 0 : i64, tpu.core_type = #tpu.core_type<tc>, window_params = [{pipeline_mode = #tpu.pipeline_mode<synchronous>, transform_indices = @transform_0, window_bounds = array<i64: 128, 128>}, {pipeline_mode = #tpu.pipeline_mode<synchronous>, transform_indices = @transform_1, window_bounds = array<i64: 128, 128>}, {pipeline_mode = #tpu.pipeline_mode<synchronous>, transform_indices = @transform_2, window_bounds = array<i64: 8, 128, 128>}, {pipeline_mode = #tpu.pipeline_mode<synchronous>, transform_indices = @transform_3, window_bounds = array<i64: 8, 1, 128>}, {pipeline_mode = #tpu.pipeline_mode<synchronous>, transform_indices = @transform_4, window_bounds = array<i64: 128, 128>}]} {
    %c0 = arith.constant 0 : index
    %c0_0 = arith.constant 0 : index
    %0 = vector.load %arg1[%c0, %c0_0] : memref<128x128xbf16, #tpu.memory_space<vmem>>, vector<128x128xbf16>
    %c0_1 = arith.constant 0 : index
    %c0_2 = arith.constant 0 : index
    %1 = vector.load %arg2[%c0_1, %c0_2] : memref<128x128xbf16, #tpu.memory_space<vmem>>, vector<128x128xbf16>
    %c0_3 = arith.constant 0 : index
    %c0_4 = arith.constant 0 : index
    %c0_5 = arith.constant 0 : index
    %2 = vector.load %arg3[%c0_3, %c0_4, %c0_5] : memref<8x128x128xbf16, #tpu.memory_space<vmem>>, vector<1x128x128xbf16>
    %3 = vector.shape_cast %2 : vector<1x128x128xbf16> to vector<128x128xbf16>
    %cst = arith.constant dense<0.000000e+00> : vector<128x128xf32>
    %4 = tpu.matmul %1, %3, %cst {dimension_numbers = #tpu.dot_dimension_numbers<[1], [0], [0], [1], [0, 0, 1, 1], [], []>} : vector<128x128xbf16>, vector<128x128xbf16>, vector<128x128xf32> -> vector<128x128xf32>
    %5 = arith.truncf %4 : vector<128x128xf32> to vector<128x128xbf16>
    %cst_6 = arith.constant dense<0.000000e+00> : vector<128x128xf32>
    %6 = tpu.matmul %0, %5, %cst_6 {dimension_numbers = #tpu.dot_dimension_numbers<[1], [0], [0], [1], [0, 0, 1, 1], [], []>} : vector<128x128xbf16>, vector<128x128xbf16>, vector<128x128xf32> -> vector<128x128xf32>
    %c0_7 = arith.constant 0 : index
    %c0_8 = arith.constant 0 : index
    %c0_9 = arith.constant 0 : index
    %7 = vector.load %arg4[%c0_7, %c0_8, %c0_9] : memref<8x1x128xf32, #tpu.memory_space<vmem>>, vector<1x1x128xf32>
    %8 = vector.shape_cast %7 : vector<1x1x128xf32> to vector<1x128xf32>
    %9 = vector.broadcast %8 : vector<1x128xf32> to vector<128x128xf32>
    %10 = arith.addf %6, %9 : vector<128x128xf32>
    %cst_10 = arith.constant 0.000000e+00 : f32
    %11 = vector.broadcast %cst_10 : f32 to vector<128x128xf32>
    %12 = arith.maximumf %10, %11 : vector<128x128xf32>
    %13 = arith.truncf %12 : vector<128x128xf32> to vector<128x128xbf16>
    %c1 = arith.constant 1 : index
    %c0_11 = arith.constant 0 : index
    %c0_12 = arith.constant 0 : index
    %14 = vector.load %arg3[%c1, %c0_11, %c0_12] : memref<8x128x128xbf16, #tpu.memory_space<vmem>>, vector<1x128x128xbf16>
    %15 = vector.shape_cast %14 : vector<1x128x128xbf16> to vector<128x128xbf16>
    %cst_13 = arith.constant dense<0.000000e+00> : vector<128x128xf32>
    %16 = tpu.matmul %13, %15, %cst_13 {dimension_numbers = #tpu.dot_dimension_numbers<[1], [0], [0], [1], [0, 0, 1, 1], [], []>} : vector<128x128xbf16>, vector<128x128xbf16>, vector<128x128xf32> -> vector<128x128xf32>
    %17 = arith.truncf %16 : vector<128x128xf32> to vector<128x128xbf16>
    %cst_14 = arith.constant dense<0.000000e+00> : vector<128x128xf32>
    %18 = tpu.matmul %0, %17, %cst_14 {dimension_numbers = #tpu.dot_dimension_numbers<[1], [0], [0], [1], [0, 0, 1, 1], [], []>} : vector<128x128xbf16>, vector<128x128xbf16>, vector<128x128xf32> -> vector<128x128xf32>
    %c1_15 = arith.constant 1 : index
    %c0_16 = arith.constant 0 : index
    %c0_17 = arith.constant 0 : index
    %19 = vector.load %arg4[%c1_15, %c0_16, %c0_17] : memref<8x1x128xf32, #tpu.memory_space<vmem>>, vector<1x1x128xf32>
    %20 = vector.shape_cast %19 : vector<1x1x128xf32> to vector<1x128xf32>
    %21 = vector.broadcast %20 : vector<1x128xf32> to vector<128x128xf32>
    %22 = arith.addf %18, %21 : vector<128x128xf32>
    %cst_18 = arith.constant 0.000000e+00 : f32
    %23 = vector.broadcast %cst_18 : f32 to vector<128x128xf32>
    %24 = arith.maximumf %22, %23 : vector<128x128xf32>
    %25 = arith.truncf %24 : vector<128x128xf32> to vector<128x128xbf16>
    %c2 = arith.constant 2 : index
    %c0_19 = arith.constant 0 : index
    %c0_20 = arith.constant 0 : index
    %26 = vector.load %arg3[%c2, %c0_19, %c0_20] : memref<8x128x128xbf16, #tpu.memory_space<vmem>>, vector<1x128x128xbf16>
    %27 = vector.shape_cast %26 : vector<1x128x128xbf16> to vector<128x128xbf16>
    %cst_21 = arith.constant dense<0.000000e+00> : vector<128x128xf32>
    %28 = tpu.matmul %25, %27, %cst_21 {dimension_numbers = #tpu.dot_dimension_numbers<[1], [0], [0], [1], [0, 0, 1, 1], [], []>} : vector<128x128xbf16>, vector<128x128xbf16>, vector<128x128xf32> -> vector<128x128xf32>
    %29 = arith.truncf %28 : vector<128x128xf32> to vector<128x128xbf16>
    %cst_22 = arith.constant dense<0.000000e+00> : vector<128x128xf32>
    %30 = tpu.matmul %0, %29, %cst_22 {dimension_numbers = #tpu.dot_dimension_numbers<[1], [0], [0], [1], [0, 0, 1, 1], [], []>} : vector<128x128xbf16>, vector<128x128xbf16>, vector<128x128xf32> -> vector<128x128xf32>
    %c2_23 = arith.constant 2 : index
    %c0_24 = arith.constant 0 : index
    %c0_25 = arith.constant 0 : index
    %31 = vector.load %arg4[%c2_23, %c0_24, %c0_25] : memref<8x1x128xf32, #tpu.memory_space<vmem>>, vector<1x1x128xf32>
    %32 = vector.shape_cast %31 : vector<1x1x128xf32> to vector<1x128xf32>
    %33 = vector.broadcast %32 : vector<1x128xf32> to vector<128x128xf32>
    %34 = arith.addf %30, %33 : vector<128x128xf32>
    %cst_26 = arith.constant 0.000000e+00 : f32
    %35 = vector.broadcast %cst_26 : f32 to vector<128x128xf32>
    %36 = arith.maximumf %34, %35 : vector<128x128xf32>
    %37 = arith.truncf %36 : vector<128x128xf32> to vector<128x128xbf16>
    %c3 = arith.constant 3 : index
    %c0_27 = arith.constant 0 : index
    %c0_28 = arith.constant 0 : index
    %38 = vector.load %arg3[%c3, %c0_27, %c0_28] : memref<8x128x128xbf16, #tpu.memory_space<vmem>>, vector<1x128x128xbf16>
    %39 = vector.shape_cast %38 : vector<1x128x128xbf16> to vector<128x128xbf16>
    %cst_29 = arith.constant dense<0.000000e+00> : vector<128x128xf32>
    %40 = tpu.matmul %37, %39, %cst_29 {dimension_numbers = #tpu.dot_dimension_numbers<[1], [0], [0], [1], [0, 0, 1, 1], [], []>} : vector<128x128xbf16>, vector<128x128xbf16>, vector<128x128xf32> -> vector<128x128xf32>
    %c3_30 = arith.constant 3 : index
    %c0_31 = arith.constant 0 : index
    %c0_32 = arith.constant 0 : index
    %41 = vector.load %arg4[%c3_30, %c0_31, %c0_32] : memref<8x1x128xf32, #tpu.memory_space<vmem>>, vector<1x1x128xf32>
    %42 = vector.shape_cast %41 : vector<1x1x128xf32> to vector<1x128xf32>
    %43 = vector.broadcast %42 : vector<1x128xf32> to vector<128x128xf32>
    %44 = arith.addf %40, %43 : vector<128x128xf32>
    %45 = arith.truncf %44 : vector<128x128xf32> to vector<128x128xbf16>
    %c4 = arith.constant 4 : index
    %c0_33 = arith.constant 0 : index
    %c0_34 = arith.constant 0 : index
    %46 = vector.load %arg3[%c4, %c0_33, %c0_34] : memref<8x128x128xbf16, #tpu.memory_space<vmem>>, vector<1x128x128xbf16>
    %47 = vector.shape_cast %46 : vector<1x128x128xbf16> to vector<128x128xbf16>
    %cst_35 = arith.constant dense<0.000000e+00> : vector<128x128xf32>
    %48 = tpu.matmul %45, %47, %cst_35 {dimension_numbers = #tpu.dot_dimension_numbers<[1], [0], [0], [1], [0, 0, 1, 1], [], []>} : vector<128x128xbf16>, vector<128x128xbf16>, vector<128x128xf32> -> vector<128x128xf32>
    %49 = arith.truncf %48 : vector<128x128xf32> to vector<128x128xbf16>
    %cst_36 = arith.constant dense<0.000000e+00> : vector<128x128xf32>
    %50 = tpu.matmul %0, %49, %cst_36 {dimension_numbers = #tpu.dot_dimension_numbers<[1], [0], [0], [1], [0, 0, 1, 1], [], []>} : vector<128x128xbf16>, vector<128x128xbf16>, vector<128x128xf32> -> vector<128x128xf32>
    %c4_37 = arith.constant 4 : index
    %c0_38 = arith.constant 0 : index
    %c0_39 = arith.constant 0 : index
    %51 = vector.load %arg4[%c4_37, %c0_38, %c0_39] : memref<8x1x128xf32, #tpu.memory_space<vmem>>, vector<1x1x128xf32>
    %52 = vector.shape_cast %51 : vector<1x1x128xf32> to vector<1x128xf32>
    %53 = vector.broadcast %52 : vector<1x128xf32> to vector<128x128xf32>
    %54 = arith.addf %50, %53 : vector<128x128xf32>
    %cst_40 = arith.constant 0.000000e+00 : f32
    %55 = vector.broadcast %cst_40 : f32 to vector<128x128xf32>
    %56 = arith.maximumf %54, %55 : vector<128x128xf32>
    %57 = arith.truncf %56 : vector<128x128xf32> to vector<128x128xbf16>
    %c5 = arith.constant 5 : index
    %c0_41 = arith.constant 0 : index
    %c0_42 = arith.constant 0 : index
    %58 = vector.load %arg3[%c5, %c0_41, %c0_42] : memref<8x128x128xbf16, #tpu.memory_space<vmem>>, vector<1x128x128xbf16>
    %59 = vector.shape_cast %58 : vector<1x128x128xbf16> to vector<128x128xbf16>
    %cst_43 = arith.constant dense<0.000000e+00> : vector<128x128xf32>
    %60 = tpu.matmul %57, %59, %cst_43 {dimension_numbers = #tpu.dot_dimension_numbers<[1], [0], [0], [1], [0, 0, 1, 1], [], []>} : vector<128x128xbf16>, vector<128x128xbf16>, vector<128x128xf32> -> vector<128x128xf32>
    %61 = arith.truncf %60 : vector<128x128xf32> to vector<128x128xbf16>
    %cst_44 = arith.constant dense<0.000000e+00> : vector<128x128xf32>
    %62 = tpu.matmul %0, %61, %cst_44 {dimension_numbers = #tpu.dot_dimension_numbers<[1], [0], [0], [1], [0, 0, 1, 1], [], []>} : vector<128x128xbf16>, vector<128x128xbf16>, vector<128x128xf32> -> vector<128x128xf32>
    %c5_45 = arith.constant 5 : index
    %c0_46 = arith.constant 0 : index
    %c0_47 = arith.constant 0 : index
    %63 = vector.load %arg4[%c5_45, %c0_46, %c0_47] : memref<8x1x128xf32, #tpu.memory_space<vmem>>, vector<1x1x128xf32>
    %64 = vector.shape_cast %63 : vector<1x1x128xf32> to vector<1x128xf32>
    %65 = vector.broadcast %64 : vector<1x128xf32> to vector<128x128xf32>
    %66 = arith.addf %62, %65 : vector<128x128xf32>
    %cst_48 = arith.constant 0.000000e+00 : f32
    %67 = vector.broadcast %cst_48 : f32 to vector<128x128xf32>
    %68 = arith.maximumf %66, %67 : vector<128x128xf32>
    %69 = arith.truncf %68 : vector<128x128xf32> to vector<128x128xbf16>
    %c6 = arith.constant 6 : index
    %c0_49 = arith.constant 0 : index
    %c0_50 = arith.constant 0 : index
    %70 = vector.load %arg3[%c6, %c0_49, %c0_50] : memref<8x128x128xbf16, #tpu.memory_space<vmem>>, vector<1x128x128xbf16>
    %71 = vector.shape_cast %70 : vector<1x128x128xbf16> to vector<128x128xbf16>
    %cst_51 = arith.constant dense<0.000000e+00> : vector<128x128xf32>
    %72 = tpu.matmul %69, %71, %cst_51 {dimension_numbers = #tpu.dot_dimension_numbers<[1], [0], [0], [1], [0, 0, 1, 1], [], []>} : vector<128x128xbf16>, vector<128x128xbf16>, vector<128x128xf32> -> vector<128x128xf32>
    %73 = arith.truncf %72 : vector<128x128xf32> to vector<128x128xbf16>
    %cst_52 = arith.constant dense<0.000000e+00> : vector<128x128xf32>
    %74 = tpu.matmul %0, %73, %cst_52 {dimension_numbers = #tpu.dot_dimension_numbers<[1], [0], [0], [1], [0, 0, 1, 1], [], []>} : vector<128x128xbf16>, vector<128x128xbf16>, vector<128x128xf32> -> vector<128x128xf32>
    %c6_53 = arith.constant 6 : index
    %c0_54 = arith.constant 0 : index
    %c0_55 = arith.constant 0 : index
    %75 = vector.load %arg4[%c6_53, %c0_54, %c0_55] : memref<8x1x128xf32, #tpu.memory_space<vmem>>, vector<1x1x128xf32>
    %76 = vector.shape_cast %75 : vector<1x1x128xf32> to vector<1x128xf32>
    %77 = vector.broadcast %76 : vector<1x128xf32> to vector<128x128xf32>
    %78 = arith.addf %74, %77 : vector<128x128xf32>
    %cst_56 = arith.constant 0.000000e+00 : f32
    %79 = vector.broadcast %cst_56 : f32 to vector<128x128xf32>
    %80 = arith.maximumf %78, %79 : vector<128x128xf32>
    %81 = arith.truncf %80 : vector<128x128xf32> to vector<128x128xbf16>
    %c7 = arith.constant 7 : index
    %c0_57 = arith.constant 0 : index
    %c0_58 = arith.constant 0 : index
    %82 = vector.load %arg3[%c7, %c0_57, %c0_58] : memref<8x128x128xbf16, #tpu.memory_space<vmem>>, vector<1x128x128xbf16>
    %83 = vector.shape_cast %82 : vector<1x128x128xbf16> to vector<128x128xbf16>
    %cst_59 = arith.constant dense<0.000000e+00> : vector<128x128xf32>
    %84 = tpu.matmul %81, %83, %cst_59 {dimension_numbers = #tpu.dot_dimension_numbers<[1], [0], [0], [1], [0, 0, 1, 1], [], []>} : vector<128x128xbf16>, vector<128x128xbf16>, vector<128x128xf32> -> vector<128x128xf32>
    %85 = arith.truncf %84 : vector<128x128xf32> to vector<128x128xbf16>
    %cst_60 = arith.constant dense<0.000000e+00> : vector<128x128xf32>
    %86 = tpu.matmul %0, %85, %cst_60 {dimension_numbers = #tpu.dot_dimension_numbers<[1], [0], [0], [1], [0, 0, 1, 1], [], []>} : vector<128x128xbf16>, vector<128x128xbf16>, vector<128x128xf32> -> vector<128x128xf32>
    %c7_61 = arith.constant 7 : index
    %c0_62 = arith.constant 0 : index
    %c0_63 = arith.constant 0 : index
    %87 = vector.load %arg4[%c7_61, %c0_62, %c0_63] : memref<8x1x128xf32, #tpu.memory_space<vmem>>, vector<1x1x128xf32>
    %88 = vector.shape_cast %87 : vector<1x1x128xf32> to vector<1x128xf32>
    %89 = vector.broadcast %88 : vector<1x128xf32> to vector<128x128xf32>
    %90 = arith.addf %86, %89 : vector<128x128xf32>
    %cst_64 = arith.constant 0.000000e+00 : f32
    %91 = vector.broadcast %cst_64 : f32 to vector<128x128xf32>
    %92 = arith.maximumf %90, %91 : vector<128x128xf32>
    %c0_65 = arith.constant 0 : index
    %c0_66 = arith.constant 0 : index
    %93 = vector.load %arg5[%c0_65, %c0_66] : memref<128x128xf32, #tpu.memory_space<vmem>>, vector<128x128xf32>
    tpu.vector_store %arg5[%c0_65, %c0_66], %92 {strides = array<i32>} : memref<128x128xf32, #tpu.memory_space<vmem>>, vector<128x128xf32>,
    return
  }
  func.func @transform_0(%arg0: i32) -> (i32, i32) {
    %c0_i32 = arith.constant 0 : i32
    %c0_i32_0 = arith.constant 0 : i32
    %c0_i32_1 = arith.constant 0 : i32
    return %c0_i32, %c0_i32_0 : i32, i32
  }
  func.func @transform_1(%arg0: i32) -> (i32, i32) {
    %c0_i32 = arith.constant 0 : i32
    %c0_i32_0 = arith.constant 0 : i32
    %c0_i32_1 = arith.constant 0 : i32
    return %c0_i32, %c0_i32_0 : i32, i32
  }
  func.func @transform_2(%arg0: i32) -> (i32, i32, i32) {
    %c0_i32 = arith.constant 0 : i32
    %c0_i32_0 = arith.constant 0 : i32
    %c0_i32_1 = arith.constant 0 : i32
    %c0_i32_2 = arith.constant 0 : i32
    return %c0_i32, %c0_i32_0, %c0_i32_1 : i32, i32, i32
  }
  func.func @transform_3(%arg0: i32) -> (i32, i32, i32) {
    %c0_i32 = arith.constant 0 : i32
    %c0_i32_0 = arith.constant 0 : i32
    %c0_i32_1 = arith.constant 0 : i32
    %c0_i32_2 = arith.constant 0 : i32
    return %c0_i32, %c0_i32_0, %c0_i32_1 : i32, i32, i32
  }
  func.func @transform_4(%arg0: i32) -> (i32, i32) {
    %c0_i32 = arith.constant 0 : i32
    %c0_i32_0 = arith.constant 0 : i32
    %c0_i32_1 = arith.constant 0 : i32
    return %c0_i32, %c0_i32_0 : i32, i32
  }
}

</mosaic_0001>

<bundles_post_ra>
// kernel: gcn_cn_v4_ae_bn1_forward.1
= control target key start
LH: loop header
LB: loop body
LE: loop exit
PB: predicated region body
PF: predicated region fallthrough
CT: control target
= control target key end

     0   :  { %9 = vsyncpa [#allocation3], 0  ;;  %s3386_s15 = smov [#allocation2]   ;;  %s3649_s0 = inlined_call_operand.vmem [shape: bf16[128,128], index: 0, kind: input, shape index: {}]   ;;  %s3650_s1 = inlined_call_operand.vmem [shape: bf16[128,128], index: 1, kind: input, shape index: {}]   ;;  %s3651_s2 = inlined_call_operand.hbm [shape: bf16[8,128,128], index: 2, kind: input, shape index: {}]   ;;  %s3652_s3 = inlined_call_operand.vmem [shape: f32[8,1,128], index: 3, kind: input, shape index: {}]   ;;  %s3653_s4 = inlined_call_operand.vmem [shape: f32[128,128], index: 4, kind: output, shape index: {}]  }
   0x1   :  { %s19_s16 = sshll.u32 %s3386_s15, 4  ;;  %s20_s16 = int_to_ptr.vmem [resolvable:$true] %s19_s16 }
   0x2   :  { %s3372_s17 = scalar_lea.vmem %s20_s16, 8192  ;;  %p3377_p1 = scmp.lt.s32.totalorder %s20_s16, %s20_s16 }
   0x3   :  { %p3373_p0 = scmp.ne.s32.totalorder %s20_s16, %s3372_s17  ;;  %p3378_p2 = scmp.lt.s32.totalorder %s3372_s17, %s3372_s17 }
   0x5   :  { %p3379_p3 = por %p3378_p2, %p3377_p1 }
   0x7   :  { %p3380_p4 = pnand %p3379_p3, %p3373_p0 }
   0x9   :  { %3383 = shalt.err (!%p3380_p4)
}
   0xa   :  { %s3387_s18 = smov 64   ;;  %s3388_s19 = smov 4  }
   0xb   :  { %25 = dma.hbm_to_vmem [thread:$0]  %s3651_s2, 8192, %s20_s16, [#allocation3], %s3387_s18, %s3387_s18, %s3388_s19  }
   0xc   :  { %3384 = dma.done.wait [#allocation3], 8192  }
   0xd   :  { %3385 = vsyncadd [#allocation3], 4294959104  ;;  %v3276_v0 = vld [vmem:[#allocation2 + $0x38] sm:$0xff]   ;;  %v3277_v1 = vld [vmem:[#allocation2 + $0x30] sm:$0xff]  }
   0xe   :  { %2777 = vmatprep.subr.bf16.mxu0 %v3276_v0  ;;  %v3278_v2 = vld [vmem:[#allocation2 + $0x28] sm:$0xff]   ;;  %v3279_v3 = vld [vmem:[#allocation2 + $0x20] sm:$0xff]   ;;  %v3280_v5 = vld [vmem:[#allocation2 + $0x18] sm:$0xff]  }
   0xf   :  { %2778 = vmatpush3.bf16.msra.mxu0 %v3276_v0  ;;  %v3284_v4 = vld [vmem:[%s3650_s1] sm:$0xff]   ;;  %v3281_v6 = vld [vmem:[#allocation2 + $0x10] sm:$0xff]   ;;  %v3282_v7 = vld [vmem:[#allocation2 + $0x8] sm:$0xff]  }
  0x10   :  { %2779 = vmatprep.subr.bf16.mxu0 %v3277_v1  ;;  %2793 = vmatprep.mubr.bf16.mxu0 %v3284_v4  ;;  %v3283_v8 = vld [vmem:[#allocation2] sm:$0xff]   ;;  %v3285_v9 = vld [vmem:[%s3650_s1 + $0x8] sm:$0xff]   ;;  %v3286_v10 = vld [vmem:[%s3650_s1 + $0x10] sm:$0xff]  }
  0x11   :  { %v3287_v11 = vld [vmem:[%s3650_s1 + $0x18] sm:$0xff]   ;;  %v3288_v12 = vld [vmem:[%s3650_s1 + $0x20] sm:$0xff]   ;;  %v3289_v13 = vld [vmem:[%s3650_s1 + $0x28] sm:$0xff]  }
  0x12   :  { %v3290_v14 = vld [vmem:[%s3650_s1 + $0x30] sm:$0xff]   ;;  %v3291_v15 = vld [vmem:[%s3650_s1 + $0x38] sm:$0xff]   ;;  %v3444_v16 = vld [vmem:[%s3649_s0] sm:$0xff]  }
  0x13   :  { %2780 = vmatpush3.bf16.msra.mxu0 %v3277_v1  ;;  %2825 = vmatprep.mubr.bf16.mxu1 %v3444_v16  ;;  %v3300_v17 = vld [vmem:[#allocation2 + $0x78] sm:$0xff]   ;;  %v3301_v18 = vld [vmem:[#allocation2 + $0x70] sm:$0xff]   ;;  %v3302_v19 = vld [vmem:[#allocation2 + $0x68] sm:$0xff]  }
  0x14   :  { %2781 = vmatprep.subr.bf16.mxu0 %v3278_v2  ;;  %v3303_v20 = vld [vmem:[#allocation2 + $0x60] sm:$0xff]   ;;  %v3304_v21 = vld [vmem:[#allocation2 + $0x58] sm:$0xff]   ;;  %v3450_v46 = vld [vmem:[%s3649_s0 + $0x8] sm:$0xff]  }
  0x15   :  { %v3455_v47 = vld [vmem:[%s3649_s0 + $0x10] sm:$0xff]   ;;  %v3462_v48 = vld [vmem:[%s3649_s0 + $0x18] sm:$0xff]   ;;  %v3467_v49 = vld [vmem:[%s3649_s0 + $0x20] sm:$0xff]  }
  0x16   :  { %v3474_v50 = vld [vmem:[%s3649_s0 + $0x28] sm:$0xff]   ;;  %v3479_v51 = vld [vmem:[%s3649_s0 + $0x30] sm:$0xff]   ;;  %v3486_v52 = vld [vmem:[%s3649_s0 + $0x38] sm:$0xff]  }
  0x17   :  { %2782 = vmatpush3.bf16.msra.mxu0 %v3278_v2  ;;  %v3305_v53 = vld [vmem:[#allocation2 + $0x50] sm:$0xff]   ;;  %v3306_v54 = vld [vmem:[#allocation2 + $0x48] sm:$0xff]   ;;  %v3307_v55 = vld [vmem:[#allocation2 + $0x40] sm:$0xff]  }
  0x18   :  { %2783 = vmatprep.subr.bf16.mxu0 %v3279_v3  ;;  %v2458_v58 = vld [vmem:[%s3652_s3] ss:$0 sm:$0xff] }
  0x1b   :  { %2784 = vmatpush3.bf16.msra.mxu0 %v3279_v3 }
  0x1c   :  { %2785 = vmatprep.subr.bf16.mxu0 %v3280_v5 }
  0x1f   :  { %2786 = vmatpush3.bf16.msra.mxu0 %v3280_v5 }
  0x20   :  { %2787 = vmatprep.subr.bf16.mxu0 %v3281_v6 }
  0x23   :  { %2788 = vmatpush3.bf16.msra.mxu0 %v3281_v6 }
  0x24   :  { %2789 = vmatprep.subr.bf16.mxu0 %v3282_v7 }
  0x27   :  { %2790 = vmatpush3.bf16.msra.mxu0 %v3282_v7 }
  0x28   :  { %2791 = vmatprep.subr.bf16.mxu0 %v3283_v8 }
  0x2b   :  { %2792 = vmatpush3.bf16.msra.mxu0 %v3283_v8 }
  0x2c   :  { %2841 = vmatprep.subr.bf16.mxu0 %v3300_v17 }
  0x2e   :  { %2794 = vmatmul.mubr.bf16.vlgmr.msra.gmra.mxu0 %v3285_v9 }
  0x2f   :  { %2797 = vmatprep.mubr.bf16.mxu0 %v3286_v10  ;;  %2842 = vmatpush3.bf16.msra.mxu0 %v3300_v17 }
  0x30   :  { %2843 = vmatprep.subr.bf16.mxu0 %v3301_v18 }
  0x33   :  { %2844 = vmatpush3.bf16.msra.mxu0 %v3301_v18 }
  0x34   :  { %2845 = vmatprep.subr.bf16.mxu0 %v3302_v19 }
  0x36   :  { %2798 = vmatmul.mubr.bf16.gmra.mxu0 %v3287_v11 }
  0x37   :  { %2801 = vmatprep.mubr.bf16.mxu0 %v3288_v12  ;;  %2846 = vmatpush3.bf16.msra.mxu0 %v3302_v19 }
  0x38   :  { %2847 = vmatprep.subr.bf16.mxu0 %v3303_v20 }
  0x3b   :  { %2848 = vmatpush3.bf16.msra.mxu0 %v3303_v20 }
  0x3c   :  { %2849 = vmatprep.subr.bf16.mxu0 %v3304_v21 }
  0x3e   :  { %2802 = vmatmul.mubr.bf16.gmra.mxu0 %v3289_v13 }
  0x3f   :  { %2805 = vmatprep.mubr.bf16.mxu0 %v3290_v14  ;;  %2850 = vmatpush3.bf16.msra.mxu0 %v3304_v21 }
  0x40   :  { %2851 = vmatprep.subr.bf16.mxu0 %v3305_v53 }
  0x43   :  { %2852 = vmatpush3.bf16.msra.mxu0 %v3305_v53 }
  0x44   :  { %2853 = vmatprep.subr.bf16.mxu0 %v3306_v54 }
  0x46   :  { %2806 = vmatmul.mubr.bf16.gmra.mxu0 %v3291_v15 }
  0x47   :  { %2854 = vmatpush3.bf16.msra.mxu0 %v3306_v54 }
  0x48   :  { %2855 = vmatprep.subr.bf16.mxu0 %v3307_v55 }
  0x4b   :  { %2856 = vmatpush3.bf16.msra.mxu0 %v3307_v55 }
  0xee   :  { %v2795_v22 = vpop.f32.mrf.mxu0 }
  0xf0   :  { %v210_v23 = vpop.f32.mrf.mxu0 }
  0xf2   :  { %v2796_v24 = vpop.f32.mrf.mxu0 }
  0xf3   :  { %v274_v44 = vpack.c.bf16 %v2796_v24, %v2795_v22 }
  0xf4   :  { %v213_v25 = vpop.f32.mrf.mxu0 }
  0xf5   :  { %v273_v45 = vpack.c.bf16 %v213_v25, %v210_v23 }
  0xf6   :  { %v2799_v26 = vpop.f32.mrf.mxu0 }
  0xf8   :  { %v226_v27 = vpop.f32.mrf.mxu0 }
  0xfa   :  { %v2800_v28 = vpop.f32.mrf.mxu0 }
  0xfb   :  { %v276_v42 = vpack.c.bf16 %v2800_v28, %v2799_v26 }
  0xfc   :  { %v229_v29 = vpop.f32.mrf.mxu0 }
  0xfd   :  { %v275_v43 = vpack.c.bf16 %v229_v29, %v226_v27 }
  0xfe   :  { %v2803_v30 = vpop.f32.mrf.mxu0 }
 0x100   :  { %v242_v31 = vpop.f32.mrf.mxu0 }
 0x102   :  { %v2804_v32 = vpop.f32.mrf.mxu0 }
 0x103   :  { %v278_v40 = vpack.c.bf16 %v2804_v32, %v2803_v30 }
 0x104   :  { %v245_v33 = vpop.f32.mrf.mxu0 }
 0x105   :  { %v277_v41 = vpack.c.bf16 %v245_v33, %v242_v31 }
 0x106   :  { %v2807_v34 = vpop.f32.mrf.mxu0 }
 0x108   :  { %v258_v35 = vpop.f32.mrf.mxu0 }
 0x10a   :  { %v2808_v36 = vpop.f32.mrf.mxu0 }
 0x10b   :  { %v280_v37 = vpack.c.bf16 %v2808_v36, %v2807_v34 }
 0x10c   :  { %v261_v38 = vpop.f32.mrf.mxu0 }
 0x10d   :  { %v279_v39 = vpack.c.bf16 %v261_v38, %v258_v35  ;;  %2809 = vmatprep.subr.bf16.mxu1 %v280_v37 }
 0x10e   :  { %2810 = vmatpush3.bf16.msra.mxu1 %v280_v37 }
 0x10f   :  { %2811 = vmatprep.subr.bf16.mxu1 %v279_v39 }
 0x112   :  { %2812 = vmatpush3.bf16.msra.mxu1 %v279_v39 }
 0x113   :  { %2813 = vmatprep.subr.bf16.mxu1 %v278_v40 }
 0x116   :  { %2814 = vmatpush3.bf16.msra.mxu1 %v278_v40 }
 0x117   :  { %2815 = vmatprep.subr.bf16.mxu1 %v277_v41 }
 0x11a   :  { %2816 = vmatpush3.bf16.msra.mxu1 %v277_v41 }
 0x11b   :  { %2817 = vmatprep.subr.bf16.mxu1 %v276_v42 }
 0x11e   :  { %2818 = vmatpush3.bf16.msra.mxu1 %v276_v42 }
 0x11f   :  { %2819 = vmatprep.subr.bf16.mxu1 %v275_v43 }
 0x122   :  { %2820 = vmatpush3.bf16.msra.mxu1 %v275_v43 }
 0x123   :  { %2821 = vmatprep.subr.bf16.mxu1 %v274_v44 }
 0x126   :  { %2822 = vmatpush3.bf16.msra.mxu1 %v274_v44 }
 0x127   :  { %2823 = vmatprep.subr.bf16.mxu1 %v273_v45 }
 0x12a   :  { %2824 = vmatpush3.bf16.msra.mxu1 %v273_v45 }
 0x12d   :  { %2826 = vmatmul.mubr.bf16.vlgmr.msra.gmra.mxu1 %v3450_v46 }
 0x12e   :  { %2829 = vmatprep.mubr.bf16.mxu1 %v3455_v47 }
 0x135   :  { %2830 = vmatmul.mubr.bf16.gmra.mxu1 %v3462_v48 }
 0x136   :  { %2833 = vmatprep.mubr.bf16.mxu1 %v3467_v49 }
 0x13d   :  { %2834 = vmatmul.mubr.bf16.gmra.mxu1 %v3474_v50 }
 0x13e   :  { %2837 = vmatprep.mubr.bf16.mxu1 %v3479_v51 }
 0x145   :  { %2838 = vmatmul.mubr.bf16.gmra.mxu1 %v3486_v52 }
 0x146   :  { %2889 = vmatprep.mubr.bf16.mxu1 %v3444_v16 }
 0x1ed   :  { %v2827_v56 = vpop.f32.mrf.mxu1 }
 0x1ee   :  { %v379_v62 = vadd.f32 %v2827_v56, %v2458_v58 }
 0x1ef   :  { %v370_v57 = vpop.f32.mrf.mxu1 }
 0x1f0   :  { %v371_v60 = vadd.f32 %v2458_v58, %v370_v57  ;;  %v435_v5 = vmax.f32 %v379_v62, 0.0  ;;  %v3308_v57 = vld [vmem:[#allocation2 + $0xb8] sm:$0xff]  }
 0x1f1   :  { %v2828_v59 = vpop.f32.mrf.mxu1  ;;  %2905 = vmatprep.subr.bf16.mxu0 %v3308_v57 }
 0x1f2   :  { %v382_v61 = vadd.f32 %v2828_v59, %v2458_v58  ;;  %v433_v3 = vmax.f32 %v371_v60, 0.0  ;;  %v3309_v59 = vld [vmem:[#allocation2 + $0xb0] sm:$0xff]   ;;  %v3310_v60 = vld [vmem:[#allocation2 + $0xa8] sm:$0xff]  }
 0x1f3   :  { %v373_v63 = vpop.f32.mrf.mxu1 }
 0x1f4   :  { %v374_v0 = vadd.f32 %v2458_v58, %v373_v63  ;;  %v436_v1 = vmax.f32 %v382_v61, 0.0  ;;  %v3311_v61 = vld [vmem:[#allocation2 + $0xa0] sm:$0xff]  }
 0x1f5   :  { %v2831_v2 = vpop.f32.mrf.mxu1 }
 0x1f6   :  { %v434_v4 = vmax.f32 %v374_v0, 0.0  ;;  %v450_v8 = vpack.c.bf16 %v436_v1, %v435_v5  ;;  %v395_v12 = vadd.f32 %v2831_v2, %v2458_v58 }
 0x1f7   :  { %v386_v6 = vpop.f32.mrf.mxu1 }
 0x1f8   :  { %v449_v7 = vpack.c.bf16 %v434_v4, %v433_v3  ;;  %v387_v10 = vadd.f32 %v2458_v58, %v386_v6  ;;  %v439_v20 = vmax.f32 %v395_v12, 0.0 }
 0x1f9   :  { %v2832_v9 = vpop.f32.mrf.mxu1 }
 0x1fa   :  { %v398_v11 = vadd.f32 %v2832_v9, %v2458_v58  ;;  %2857 = vmatprep.mubr.bf16.mxu0 %v449_v7  ;;  %v437_v18 = vmax.f32 %v387_v10, 0.0 }
 0x1fb   :  { %v389_v13 = vpop.f32.mrf.mxu1  ;;  %2858 = vmatmul.mubr.bf16.vlgmr.msra.gmra.mxu0 %v450_v8 }
 0x1fc   :  { %v390_v14 = vadd.f32 %v2458_v58, %v389_v13  ;;  %v440_v15 = vmax.f32 %v398_v11, 0.0  ;;  %2906 = vmatpush3.bf16.msra.mxu0 %v3308_v57 }
 0x1fd   :  { %v2835_v17 = vpop.f32.mrf.mxu1  ;;  %2907 = vmatprep.subr.bf16.mxu0 %v3309_v59 }
 0x1fe   :  { %v438_v19 = vmax.f32 %v390_v14, 0.0  ;;  %v452_v23 = vpack.c.bf16 %v440_v15, %v439_v20  ;;  %v411_v27 = vadd.f32 %v2835_v17, %v2458_v58 }
 0x1ff   :  { %v402_v21 = vpop.f32.mrf.mxu1 }
 0x200   :  { %v451_v22 = vpack.c.bf16 %v438_v19, %v437_v18  ;;  %v403_v25 = vadd.f32 %v2458_v58, %v402_v21  ;;  %v443_v34 = vmax.f32 %v411_v27, 0.0  ;;  %2908 = vmatpush3.bf16.msra.mxu0 %v3309_v59 }
 0x201   :  { %v2836_v24 = vpop.f32.mrf.mxu1  ;;  %2909 = vmatprep.subr.bf16.mxu0 %v3310_v60 }
 0x202   :  { %v414_v26 = vadd.f32 %v2836_v24, %v2458_v58  ;;  %2861 = vmatprep.mubr.bf16.mxu0 %v451_v22  ;;  %v441_v32 = vmax.f32 %v403_v25, 0.0  ;;  %v3314_v24 = vld [vmem:[#allocation2 + $0x88] sm:$0xff]   ;;  %v3315_v25 = vld [vmem:[#allocation2 + $0x80] sm:$0xff]  }
 0x203   :  { %v405_v28 = vpop.f32.mrf.mxu1  ;;  %2862 = vmatmul.mubr.bf16.gmra.mxu0 %v452_v23  ;;  %v3313_v23 = vld [vmem:[#allocation2 + $0x90] sm:$0xff]  }
 0x204   :  { %v406_v29 = vadd.f32 %v2458_v58, %v405_v28  ;;  %v444_v30 = vmax.f32 %v414_v26, 0.0  ;;  %2910 = vmatpush3.bf16.msra.mxu0 %v3310_v60  ;;  %v2476_v28 = vld [vmem:[%s3652_s3 + $0x1] ss:$0 sm:$0xff] }
 0x205   :  { %v2839_v31 = vpop.f32.mrf.mxu1  ;;  %2911 = vmatprep.subr.bf16.mxu0 %v3311_v61 }
 0x206   :  { %v442_v33 = vmax.f32 %v406_v29, 0.0  ;;  %v454_v37 = vpack.c.bf16 %v444_v30, %v443_v34  ;;  %v427_v41 = vadd.f32 %v2839_v31, %v2458_v58 }
 0x207   :  { %v418_v35 = vpop.f32.mrf.mxu1 }
 0x208   :  { %v453_v36 = vpack.c.bf16 %v442_v33, %v441_v32  ;;  %v419_v39 = vadd.f32 %v2458_v58, %v418_v35  ;;  %v447_v54 = vmax.f32 %v427_v41, 0.0  ;;  %2912 = vmatpush3.bf16.msra.mxu0 %v3311_v61 }
 0x209   :  { %v2840_v38 = vpop.f32.mrf.mxu1 }
 0x20a   :  { %v430_v40 = vadd.f32 %v2840_v38, %v2458_v58  ;;  %2865 = vmatprep.mubr.bf16.mxu0 %v453_v36  ;;  %v445_v45 = vmax.f32 %v419_v39, 0.0 }
 0x20b   :  { %v421_v42 = vpop.f32.mrf.mxu1  ;;  %2866 = vmatmul.mubr.bf16.gmra.mxu0 %v454_v37 }
 0x20c   :  { %v422_v43 = vadd.f32 %v2458_v58, %v421_v42  ;;  %v448_v44 = vmax.f32 %v430_v40, 0.0  ;;  %v3312_v58 = vld [vmem:[#allocation2 + $0x98] sm:$0xff]  }
 0x20d   :  { %2913 = vmatprep.subr.bf16.mxu0 %v3312_v58 }
 0x20e   :  { %v446_v53 = vmax.f32 %v422_v43, 0.0  ;;  %v456_v56 = vpack.c.bf16 %v448_v44, %v447_v54  ;;  %2914 = vmatpush3.bf16.msra.mxu0 %v3312_v58 }
 0x20f   :  { %2915 = vmatprep.subr.bf16.mxu0 %v3313_v23 }
 0x210   :  { %v455_v55 = vpack.c.bf16 %v446_v53, %v445_v45 }
 0x212   :  { %2869 = vmatprep.mubr.bf16.mxu0 %v455_v55  ;;  %2916 = vmatpush3.bf16.msra.mxu0 %v3313_v23 }
 0x213   :  { %2870 = vmatmul.mubr.bf16.gmra.mxu0 %v456_v56  ;;  %2917 = vmatprep.subr.bf16.mxu0 %v3314_v24 }
 0x216   :  { %2918 = vmatpush3.bf16.msra.mxu0 %v3314_v24 }
 0x217   :  { %2919 = vmatprep.subr.bf16.mxu0 %v3315_v25 }
 0x21a   :  { %2920 = vmatpush3.bf16.msra.mxu0 %v3315_v25 }
 0x2bb   :  { %v2859_v62 = vpop.f32.mrf.mxu0 }
 0x2bd   :  { %v556_v63 = vpop.f32.mrf.mxu0 }
 0x2bf   :  { %v2860_v0 = vpop.f32.mrf.mxu0 }
 0x2c0   :  { %v620_v21 = vpack.c.bf16 %v2860_v0, %v2859_v62 }
 0x2c1   :  { %v559_v1 = vpop.f32.mrf.mxu0 }
 0x2c2   :  { %v619_v22 = vpack.c.bf16 %v559_v1, %v556_v63 }
 0x2c3   :  { %v2863_v2 = vpop.f32.mrf.mxu0 }
 0x2c5   :  { %v572_v3 = vpop.f32.mrf.mxu0 }
 0x2c7   :  { %v2864_v4 = vpop.f32.mrf.mxu0 }
 0x2c8   :  { %v622_v19 = vpack.c.bf16 %v2864_v4, %v2863_v2 }
 0x2c9   :  { %v575_v5 = vpop.f32.mrf.mxu0 }
 0x2ca   :  { %v621_v20 = vpack.c.bf16 %v575_v5, %v572_v3 }
 0x2cb   :  { %v2867_v6 = vpop.f32.mrf.mxu0 }
 0x2cd   :  { %v588_v7 = vpop.f32.mrf.mxu0 }
 0x2cf   :  { %v2868_v8 = vpop.f32.mrf.mxu0 }
 0x2d0   :  { %v624_v17 = vpack.c.bf16 %v2868_v8, %v2867_v6 }
 0x2d1   :  { %v591_v9 = vpop.f32.mrf.mxu0 }
 0x2d2   :  { %v623_v18 = vpack.c.bf16 %v591_v9, %v588_v7 }
 0x2d3   :  { %v2871_v10 = vpop.f32.mrf.mxu0 }
 0x2d5   :  { %v604_v11 = vpop.f32.mrf.mxu0 }
 0x2d7   :  { %v2872_v12 = vpop.f32.mrf.mxu0 }
 0x2d8   :  { %v626_v13 = vpack.c.bf16 %v2872_v12, %v2871_v10 }
 0x2d9   :  { %v607_v14 = vpop.f32.mrf.mxu0 }
 0x2da   :  { %v625_v15 = vpack.c.bf16 %v607_v14, %v604_v11  ;;  %2873 = vmatprep.subr.bf16.mxu1 %v626_v13 }
 0x2db   :  { %2874 = vmatpush3.bf16.msra.mxu1 %v626_v13 }
 0x2dc   :  { %2875 = vmatprep.subr.bf16.mxu1 %v625_v15 }
 0x2df   :  { %2876 = vmatpush3.bf16.msra.mxu1 %v625_v15 }
 0x2e0   :  { %2877 = vmatprep.subr.bf16.mxu1 %v624_v17 }
 0x2e3   :  { %2878 = vmatpush3.bf16.msra.mxu1 %v624_v17 }
 0x2e4   :  { %2879 = vmatprep.subr.bf16.mxu1 %v623_v18 }
 0x2e7   :  { %2880 = vmatpush3.bf16.msra.mxu1 %v623_v18 }
 0x2e8   :  { %2881 = vmatprep.subr.bf16.mxu1 %v622_v19 }
 0x2eb   :  { %2882 = vmatpush3.bf16.msra.mxu1 %v622_v19 }
 0x2ec   :  { %2883 = vmatprep.subr.bf16.mxu1 %v621_v20 }
 0x2ef   :  { %2884 = vmatpush3.bf16.msra.mxu1 %v621_v20 }
 0x2f0   :  { %2885 = vmatprep.subr.bf16.mxu1 %v620_v21 }
 0x2f3   :  { %2886 = vmatpush3.bf16.msra.mxu1 %v620_v21 }
 0x2f4   :  { %2887 = vmatprep.subr.bf16.mxu1 %v619_v22 }
 0x2f7   :  { %2888 = vmatpush3.bf16.msra.mxu1 %v619_v22 }
 0x2fa   :  { %2890 = vmatmul.mubr.bf16.vlgmr.msra.gmra.mxu1 %v3450_v46 }
 0x2fb   :  { %2893 = vmatprep.mubr.bf16.mxu1 %v3455_v47 }
 0x302   :  { %2894 = vmatmul.mubr.bf16.gmra.mxu1 %v3462_v48 }
 0x303   :  { %2897 = vmatprep.mubr.bf16.mxu1 %v3467_v49 }
 0x30a   :  { %2898 = vmatmul.mubr.bf16.gmra.mxu1 %v3474_v50 }
 0x30b   :  { %2901 = vmatprep.mubr.bf16.mxu1 %v3479_v51 }
 0x312   :  { %2902 = vmatmul.mubr.bf16.gmra.mxu1 %v3486_v52 }
 0x313   :  { %2953 = vmatprep.mubr.bf16.mxu1 %v3444_v16 }
 0x3ba   :  { %v2891_v26 = vpop.f32.mrf.mxu1 }
 0x3bb   :  { %v678_v32 = vadd.f32 %v2891_v26, %v2476_v28 }
 0x3bc   :  { %v669_v27 = vpop.f32.mrf.mxu1 }
 0x3bd   :  { %v670_v30 = vadd.f32 %v2476_v28, %v669_v27  ;;  %v734_v39 = vmax.f32 %v678_v32, 0.0  ;;  %v3316_v27 = vld [vmem:[#allocation2 + $0xf8] sm:$0xff]  }
 0x3be   :  { %v2892_v29 = vpop.f32.mrf.mxu1  ;;  %2969 = vmatprep.subr.bf16.mxu0 %v3316_v27 }
 0x3bf   :  { %v681_v31 = vadd.f32 %v2892_v29, %v2476_v28  ;;  %v732_v37 = vmax.f32 %v670_v30, 0.0  ;;  %v3317_v29 = vld [vmem:[#allocation2 + $0xf0] sm:$0xff]   ;;  %v3318_v30 = vld [vmem:[#allocation2 + $0xe8] sm:$0xff]  }
 0x3c0   :  { %v672_v33 = vpop.f32.mrf.mxu1 }
 0x3c1   :  { %v673_v34 = vadd.f32 %v2476_v28, %v672_v33  ;;  %v735_v35 = vmax.f32 %v681_v31, 0.0  ;;  %v3319_v31 = vld [vmem:[#allocation2 + $0xe0] sm:$0xff]  }
 0x3c2   :  { %v2895_v36 = vpop.f32.mrf.mxu1 }
 0x3c3   :  { %v733_v38 = vmax.f32 %v673_v34, 0.0  ;;  %v749_v42 = vpack.c.bf16 %v735_v35, %v734_v39  ;;  %v694_v53 = vadd.f32 %v2895_v36, %v2476_v28 }
 0x3c4   :  { %v685_v40 = vpop.f32.mrf.mxu1 }
 0x3c5   :  { %v748_v41 = vpack.c.bf16 %v733_v38, %v732_v37  ;;  %v686_v44 = vadd.f32 %v2476_v28, %v685_v40  ;;  %v738_v61 = vmax.f32 %v694_v53, 0.0 }
 0x3c6   :  { %v2896_v43 = vpop.f32.mrf.mxu1 }
 0x3c7   :  { %v697_v45 = vadd.f32 %v2896_v43, %v2476_v28  ;;  %2921 = vmatprep.mubr.bf16.mxu0 %v748_v41  ;;  %v736_v59 = vmax.f32 %v686_v44, 0.0 }
 0x3c8   :  { %v688_v54 = vpop.f32.mrf.mxu1  ;;  %2922 = vmatmul.mubr.bf16.vlgmr.msra.gmra.mxu0 %v749_v42 }
 0x3c9   :  { %v689_v55 = vadd.f32 %v2476_v28, %v688_v54  ;;  %v739_v56 = vmax.f32 %v697_v45, 0.0  ;;  %2970 = vmatpush3.bf16.msra.mxu0 %v3316_v27 }
 0x3ca   :  { %v2899_v57 = vpop.f32.mrf.mxu1  ;;  %2971 = vmatprep.subr.bf16.mxu0 %v3317_v29 }
 0x3cb   :  { %v737_v60 = vmax.f32 %v689_v55, 0.0  ;;  %v751_v63 = vpack.c.bf16 %v739_v56, %v738_v61  ;;  %v710_v3 = vadd.f32 %v2899_v57, %v2476_v28 }
 0x3cc   :  { %v701_v58 = vpop.f32.mrf.mxu1 }
 0x3cd   :  { %v750_v62 = vpack.c.bf16 %v737_v60, %v736_v59  ;;  %v702_v1 = vadd.f32 %v2476_v28, %v701_v58  ;;  %v742_v10 = vmax.f32 %v710_v3, 0.0  ;;  %2972 = vmatpush3.bf16.msra.mxu0 %v3317_v29  ;;  %v3325_v3 = vld [vmem:[#allocation2 + $0x130] sm:$0xff]  }
 0x3ce   :  { %v2900_v0 = vpop.f32.mrf.mxu1  ;;  %2973 = vmatprep.subr.bf16.mxu0 %v3318_v30 }
 0x3cf   :  { %v713_v2 = vadd.f32 %v2900_v0, %v2476_v28  ;;  %2925 = vmatprep.mubr.bf16.mxu0 %v750_v62  ;;  %v740_v8 = vmax.f32 %v702_v1, 0.0  ;;  %v3322_v0 = vld [vmem:[#allocation2 + $0xc8] sm:$0xff]   ;;  %v3323_v1 = vld [vmem:[#allocation2 + $0xc0] sm:$0xff]  }
 0x3d0   :  { %v704_v4 = vpop.f32.mrf.mxu1  ;;  %2926 = vmatmul.mubr.bf16.gmra.mxu0 %v751_v63  ;;  %v3321_v63 = vld [vmem:[#allocation2 + $0xd0] sm:$0xff]  }
 0x3d1   :  { %v705_v5 = vadd.f32 %v2476_v28, %v704_v4  ;;  %v743_v6 = vmax.f32 %v713_v2, 0.0  ;;  %2974 = vmatpush3.bf16.msra.mxu0 %v3318_v30  ;;  %v3324_v2 = vld [vmem:[#allocation2 + $0x138] sm:$0xff]   ;;  %v3326_v4 = vld [vmem:[#allocation2 + $0x128] sm:$0xff]  }
 0x3d2   :  { %v2903_v7 = vpop.f32.mrf.mxu1  ;;  %2975 = vmatprep.subr.bf16.mxu0 %v3319_v31 }
 0x3d3   :  { %v741_v9 = vmax.f32 %v705_v5, 0.0  ;;  %v753_v13 = vpack.c.bf16 %v743_v6, %v742_v10  ;;  %v726_v18 = vadd.f32 %v2903_v7, %v2476_v28  ;;  %v3327_v5 = vld [vmem:[#allocation2 + $0x120] sm:$0xff]   ;;  %v3328_v6 = vld [vmem:[#allocation2 + $0x118] sm:$0xff]  }
 0x3d4   :  { %v717_v11 = vpop.f32.mrf.mxu1 }
 0x3d5   :  { %v752_v12 = vpack.c.bf16 %v741_v9, %v740_v8  ;;  %v718_v15 = vadd.f32 %v2476_v28, %v717_v11  ;;  %v746_v24 = vmax.f32 %v726_v18, 0.0  ;;  %2976 = vmatpush3.bf16.msra.mxu0 %v3319_v31  ;;  %v2486_v9 = vld [vmem:[%s3652_s3 + $0x2] ss:$0 sm:$0xff] }
 0x3d6   :  { %v2904_v14 = vpop.f32.mrf.mxu1 }
 0x3d7   :  { %v729_v17 = vadd.f32 %v2904_v14, %v2476_v28  ;;  %2929 = vmatprep.mubr.bf16.mxu0 %v752_v12  ;;  %v744_v22 = vmax.f32 %v718_v15, 0.0 }
 0x3d8   :  { %v720_v19 = vpop.f32.mrf.mxu1  ;;  %2930 = vmatmul.mubr.bf16.gmra.mxu0 %v753_v13 }
 0x3d9   :  { %v721_v20 = vadd.f32 %v2476_v28, %v720_v19  ;;  %v747_v21 = vmax.f32 %v729_v17, 0.0  ;;  %v3320_v28 = vld [vmem:[#allocation2 + $0xd8] sm:$0xff]  }
 0x3da   :  { %2977 = vmatprep.subr.bf16.mxu0 %v3320_v28 }
 0x3db   :  { %v745_v23 = vmax.f32 %v721_v20, 0.0  ;;  %v755_v26 = vpack.c.bf16 %v747_v21, %v746_v24  ;;  %2978 = vmatpush3.bf16.msra.mxu0 %v3320_v28 }
 0x3dc   :  { %2979 = vmatprep.subr.bf16.mxu0 %v3321_v63 }
 0x3dd   :  { %v754_v25 = vpack.c.bf16 %v745_v23, %v744_v22 }
 0x3df   :  { %2933 = vmatprep.mubr.bf16.mxu0 %v754_v25  ;;  %2980 = vmatpush3.bf16.msra.mxu0 %v3321_v63 }
 0x3e0   :  { %2934 = vmatmul.mubr.bf16.gmra.mxu0 %v755_v26  ;;  %2981 = vmatprep.subr.bf16.mxu0 %v3322_v0 }
 0x3e3   :  { %2982 = vmatpush3.bf16.msra.mxu0 %v3322_v0 }
 0x3e4   :  { %2983 = vmatprep.subr.bf16.mxu0 %v3323_v1 }
 0x3e7   :  { %2984 = vmatpush3.bf16.msra.mxu0 %v3323_v1 }
 0x488   :  { %v2923_v32 = vpop.f32.mrf.mxu0 }
 0x48a   :  { %v855_v33 = vpop.f32.mrf.mxu0 }
 0x48c   :  { %v2924_v34 = vpop.f32.mrf.mxu0 }
 0x48d   :  { %v919_v58 = vpack.c.bf16 %v2924_v34, %v2923_v32 }
 0x48e   :  { %v858_v35 = vpop.f32.mrf.mxu0 }
 0x48f   :  { %v918_v62 = vpack.c.bf16 %v858_v35, %v855_v33 }
 0x490   :  { %v2927_v36 = vpop.f32.mrf.mxu0 }
 0x492   :  { %v871_v37 = vpop.f32.mrf.mxu0 }
 0x494   :  { %v2928_v38 = vpop.f32.mrf.mxu0 }
 0x495   :  { %v921_v60 = vpack.c.bf16 %v2928_v38, %v2927_v36 }
 0x496   :  { %v874_v39 = vpop.f32.mrf.mxu0 }
 0x497   :  { %v920_v61 = vpack.c.bf16 %v874_v39, %v871_v37 }
 0x498   :  { %v2931_v40 = vpop.f32.mrf.mxu0 }
 0x49a   :  { %v887_v41 = vpop.f32.mrf.mxu0 }
 0x49c   :  { %v2932_v42 = vpop.f32.mrf.mxu0 }
 0x49d   :  { %v923_v57 = vpack.c.bf16 %v2932_v42, %v2931_v40 }
 0x49e   :  { %v890_v43 = vpop.f32.mrf.mxu0 }
 0x49f   :  { %v922_v59 = vpack.c.bf16 %v890_v43, %v887_v41 }
 0x4a0   :  { %v2935_v44 = vpop.f32.mrf.mxu0 }
 0x4a2   :  { %v903_v45 = vpop.f32.mrf.mxu0 }
 0x4a4   :  { %v2936_v53 = vpop.f32.mrf.mxu0 }
 0x4a5   :  { %v925_v54 = vpack.c.bf16 %v2936_v53, %v2935_v44 }
 0x4a6   :  { %v906_v55 = vpop.f32.mrf.mxu0 }
 0x4a7   :  { %v924_v56 = vpack.c.bf16 %v906_v55, %v903_v45  ;;  %2937 = vmatprep.subr.bf16.mxu1 %v925_v54 }
 0x4a8   :  { %2938 = vmatpush3.bf16.msra.mxu1 %v925_v54 }
 0x4a9   :  { %2939 = vmatprep.subr.bf16.mxu1 %v924_v56 }
 0x4ac   :  { %2940 = vmatpush3.bf16.msra.mxu1 %v924_v56 }
 0x4ad   :  { %2941 = vmatprep.subr.bf16.mxu1 %v923_v57 }
 0x4b0   :  { %2942 = vmatpush3.bf16.msra.mxu1 %v923_v57 }
 0x4b1   :  { %2943 = vmatprep.subr.bf16.mxu1 %v922_v59 }
 0x4b4   :  { %2944 = vmatpush3.bf16.msra.mxu1 %v922_v59 }
 0x4b5   :  { %2945 = vmatprep.subr.bf16.mxu1 %v921_v60 }
 0x4b8   :  { %2946 = vmatpush3.bf16.msra.mxu1 %v921_v60 }
 0x4b9   :  { %2947 = vmatprep.subr.bf16.mxu1 %v920_v61 }
 0x4bc   :  { %2948 = vmatpush3.bf16.msra.mxu1 %v920_v61 }
 0x4bd   :  { %2949 = vmatprep.subr.bf16.mxu1 %v919_v58 }
 0x4c0   :  { %2950 = vmatpush3.bf16.msra.mxu1 %v919_v58 }
 0x4c1   :  { %2951 = vmatprep.subr.bf16.mxu1 %v918_v62 }
 0x4c4   :  { %2952 = vmatpush3.bf16.msra.mxu1 %v918_v62 }
 0x4c5   :  { %3001 = vmatprep.subr.bf16.mxu1 %v3324_v2 }
 0x4c7   :  { %2954 = vmatmul.mubr.bf16.vlgmr.msra.gmra.mxu1 %v3450_v46 }
 0x4c8   :  { %2957 = vmatprep.mubr.bf16.mxu1 %v3455_v47  ;;  %3002 = vmatpush3.bf16.msra.mxu1 %v3324_v2 }
 0x4c9   :  { %3003 = vmatprep.subr.bf16.mxu1 %v3325_v3 }
 0x4cc   :  { %3004 = vmatpush3.bf16.msra.mxu1 %v3325_v3 }
 0x4cd   :  { %3005 = vmatprep.subr.bf16.mxu1 %v3326_v4 }
 0x4cf   :  { %2958 = vmatmul.mubr.bf16.gmra.mxu1 %v3462_v48 }
 0x4d0   :  { %2961 = vmatprep.mubr.bf16.mxu1 %v3467_v49  ;;  %3006 = vmatpush3.bf16.msra.mxu1 %v3326_v4 }
 0x4d1   :  { %3007 = vmatprep.subr.bf16.mxu1 %v3327_v5 }
 0x4d4   :  { %3008 = vmatpush3.bf16.msra.mxu1 %v3327_v5 }
 0x4d5   :  { %3009 = vmatprep.subr.bf16.mxu1 %v3328_v6 }
 0x4d7   :  { %2962 = vmatmul.mubr.bf16.gmra.mxu1 %v3474_v50 }
 0x4d8   :  { %2965 = vmatprep.mubr.bf16.mxu1 %v3479_v51  ;;  %3010 = vmatpush3.bf16.msra.mxu1 %v3328_v6 }
 0x4df   :  { %2966 = vmatmul.mubr.bf16.gmra.mxu1 %v3486_v52 }
 0x587   :  { %v2955_v7 = vpop.f32.mrf.mxu1 }
 0x588   :  { %v977_v13 = vadd.f32 %v2955_v7, %v2486_v9 }
 0x589   :  { %v968_v8 = vpop.f32.mrf.mxu1 }
 0x58a   :  { %v969_v11 = vadd.f32 %v2486_v9, %v968_v8  ;;  %v1033_v21 = vmax.f32 %v977_v13, 0.0  ;;  %v3329_v8 = vld [vmem:[#allocation2 + $0x110] sm:$0xff]  }
 0x58b   :  { %v2956_v10 = vpop.f32.mrf.mxu1  ;;  %3011 = vmatprep.subr.bf16.mxu1 %v3329_v8 }
 0x58c   :  { %v980_v12 = vadd.f32 %v2956_v10, %v2486_v9  ;;  %v1031_v19 = vmax.f32 %v969_v11, 0.0  ;;  %3012 = vmatpush3.bf16.msra.mxu1 %v3329_v8  ;;  %v3330_v10 = vld [vmem:[#allocation2 + $0x108] sm:$0xff]   ;;  %v3331_v11 = vld [vmem:[#allocation2 + $0x100] sm:$0xff]  }
 0x58d   :  { %v971_v14 = vpop.f32.mrf.mxu1  ;;  %3013 = vmatprep.subr.bf16.mxu1 %v3330_v10 }
 0x58e   :  { %v972_v15 = vadd.f32 %v2486_v9, %v971_v14  ;;  %v1034_v17 = vmax.f32 %v980_v12, 0.0  ;;  %v2488_v14 = vld [vmem:[%s3652_s3 + $0x3] ss:$0 sm:$0xff] }
 0x58f   :  { %v2959_v18 = vpop.f32.mrf.mxu1 }
 0x590   :  { %v1032_v20 = vmax.f32 %v972_v15, 0.0  ;;  %v1048_v24 = vpack.c.bf16 %v1034_v17, %v1033_v21  ;;  %v993_v29 = vadd.f32 %v2959_v18, %v2486_v9  ;;  %3014 = vmatpush3.bf16.msra.mxu1 %v3330_v10 }
 0x591   :  { %v984_v22 = vpop.f32.mrf.mxu1  ;;  %3015 = vmatprep.subr.bf16.mxu1 %v3331_v11 }
 0x592   :  { %v1047_v23 = vpack.c.bf16 %v1032_v20, %v1031_v19  ;;  %v985_v26 = vadd.f32 %v2486_v9, %v984_v22  ;;  %v1037_v35 = vmax.f32 %v993_v29, 0.0 }
 0x593   :  { %v2960_v25 = vpop.f32.mrf.mxu1 }
 0x594   :  { %v996_v27 = vadd.f32 %v2960_v25, %v2486_v9  ;;  %2985 = vmatprep.mubr.bf16.mxu0 %v1047_v23  ;;  %v1035_v33 = vmax.f32 %v985_v26, 0.0  ;;  %3016 = vmatpush3.bf16.msra.mxu1 %v3331_v11 }
 0x595   :  { %v987_v30 = vpop.f32.mrf.mxu1  ;;  %2986 = vmatmul.mubr.bf16.vlgmr.msra.gmra.mxu0 %v1048_v24 }
 0x596   :  { %v988_v31 = vadd.f32 %v2486_v9, %v987_v30  ;;  %v1038_v28 = vmax.f32 %v996_v27, 0.0 }
 0x597   :  { %v2963_v32 = vpop.f32.mrf.mxu1 }
 0x598   :  { %v1036_v34 = vmax.f32 %v988_v31, 0.0  ;;  %v1050_v38 = vpack.c.bf16 %v1038_v28, %v1037_v35  ;;  %v1009_v42 = vadd.f32 %v2963_v32, %v2486_v9 }
 0x599   :  { %v1000_v36 = vpop.f32.mrf.mxu1 }
 0x59a   :  { %v1049_v37 = vpack.c.bf16 %v1036_v34, %v1035_v33  ;;  %v1001_v40 = vadd.f32 %v2486_v9, %v1000_v36  ;;  %v1041_v56 = vmax.f32 %v1009_v42, 0.0 }
 0x59b   :  { %v2964_v39 = vpop.f32.mrf.mxu1 }
 0x59c   :  { %v1012_v41 = vadd.f32 %v2964_v39, %v2486_v9  ;;  %2989 = vmatprep.mubr.bf16.mxu0 %v1049_v37  ;;  %v1039_v54 = vmax.f32 %v1001_v40, 0.0 }
 0x59d   :  { %v1003_v43 = vpop.f32.mrf.mxu1  ;;  %2990 = vmatmul.mubr.bf16.gmra.mxu0 %v1050_v38 }
 0x59e   :  { %v1004_v44 = vadd.f32 %v2486_v9, %v1003_v43  ;;  %v1042_v45 = vmax.f32 %v1012_v41, 0.0 }
 0x59f   :  { %v2967_v53 = vpop.f32.mrf.mxu1 }
 0x5a0   :  { %v1040_v55 = vmax.f32 %v1004_v44, 0.0  ;;  %v1052_v60 = vpack.c.bf16 %v1042_v45, %v1041_v56  ;;  %v1025_v63 = vadd.f32 %v2967_v53, %v2486_v9 }
 0x5a1   :  { %v1016_v57 = vpop.f32.mrf.mxu1 }
 0x5a2   :  { %v1051_v59 = vpack.c.bf16 %v1040_v55, %v1039_v54  ;;  %v1017_v58 = vadd.f32 %v2486_v9, %v1016_v57  ;;  %v1045_v5 = vmax.f32 %v1025_v63, 0.0  ;;  %v3336_v63 = vld [vmem:[#allocation2 + $0x158] sm:$0xff]  }
 0x5a3   :  { %v2968_v61 = vpop.f32.mrf.mxu1 }
 0x5a4   :  { %v1028_v62 = vadd.f32 %v2968_v61, %v2486_v9  ;;  %2993 = vmatprep.mubr.bf16.mxu0 %v1051_v59  ;;  %v1043_v3 = vmax.f32 %v1017_v58, 0.0  ;;  %v3333_v61 = vld [vmem:[#allocation2 + $0x170] sm:$0xff]   ;;  %v3334_v58 = vld [vmem:[#allocation2 + $0x168] sm:$0xff]  }
 0x5a5   :  { %v1019_v0 = vpop.f32.mrf.mxu1  ;;  %2994 = vmatmul.mubr.bf16.gmra.mxu0 %v1052_v60  ;;  %v3332_v60 = vld [vmem:[#allocation2 + $0x178] sm:$0xff]  }
 0x5a6   :  { %v1020_v1 = vadd.f32 %v2486_v9, %v1019_v0  ;;  %v1046_v2 = vmax.f32 %v1028_v62, 0.0  ;;  %3065 = vmatprep.subr.bf16.mxu1 %v3332_v60  ;;  %v3335_v62 = vld [vmem:[#allocation2 + $0x160] sm:$0xff]  }
 0x5a8   :  { %v1044_v4 = vmax.f32 %v1020_v1, 0.0  ;;  %v1054_v7 = vpack.c.bf16 %v1046_v2, %v1045_v5 }
 0x5aa   :  { %v1053_v6 = vpack.c.bf16 %v1044_v4, %v1043_v3 }
 0x5ac   :  { %2997 = vmatprep.mubr.bf16.mxu0 %v1053_v6 }
 0x5ad   :  { %2998 = vmatmul.mubr.bf16.gmra.mxu0 %v1054_v7 }
 0x5ae   :  { %3049 = vmatprep.mubr.bf16.mxu0 %v3444_v16 }
 0x655   :  { %v2987_v9 = vpop.f32.mrf.mxu0 }
 0x656   :  { %v1171_v19 = vadd.f32 %v2987_v9, %v2488_v14 }
 0x657   :  { %v1162_v12 = vpop.f32.mrf.mxu0 }
 0x658   :  { %v1163_v18 = vadd.f32 %v2488_v14, %v1162_v12 }
 0x659   :  { %v2988_v13 = vpop.f32.mrf.mxu0 }
 0x65a   :  { %v1174_v15 = vadd.f32 %v2988_v13, %v2488_v14 }
 0x65b   :  { %v1165_v17 = vpop.f32.mrf.mxu0 }
 0x65c   :  { %v1166_v16 = vadd.f32 %v2488_v14, %v1165_v17  ;;  %v1226_v22 = vpack.c.bf16 %v1174_v15, %v1171_v19 }
 0x65d   :  { %v2991_v20 = vpop.f32.mrf.mxu0 }
 0x65e   :  { %v1225_v21 = vpack.c.bf16 %v1166_v16, %v1163_v18  ;;  %v1187_v30 = vadd.f32 %v2991_v20, %v2488_v14 }
 0x65f   :  { %v1178_v23 = vpop.f32.mrf.mxu0 }
 0x660   :  { %3017 = vmatprep.mubr.bf16.mxu1 %v1225_v21  ;;  %v1179_v27 = vadd.f32 %v2488_v14, %v1178_v23 }
 0x661   :  { %v2992_v24 = vpop.f32.mrf.mxu0  ;;  %3018 = vmatmul.mubr.bf16.vlgmr.msra.gmra.mxu1 %v1226_v22 }
 0x662   :  { %v1190_v25 = vadd.f32 %v2992_v24, %v2488_v14  ;;  %3066 = vmatpush3.bf16.msra.mxu1 %v3332_v60  ;;  %v3528_v24 = vld [vmem:[%s3649_s0] sm:$0xff]  }
 0x663   :  { %v1181_v26 = vpop.f32.mrf.mxu0  ;;  %3067 = vmatprep.subr.bf16.mxu1 %v3333_v61 }
 0x664   :  { %v1182_v29 = vadd.f32 %v2488_v14, %v1181_v26  ;;  %v1228_v32 = vpack.c.bf16 %v1190_v25, %v1187_v30 }
 0x665   :  { %v2995_v31 = vpop.f32.mrf.mxu0 }
 0x666   :  { %v1227_v28 = vpack.c.bf16 %v1182_v29, %v1179_v27  ;;  %v1203_v39 = vadd.f32 %v2995_v31, %v2488_v14  ;;  %3068 = vmatpush3.bf16.msra.mxu1 %v3333_v61 }
 0x667   :  { %v1194_v33 = vpop.f32.mrf.mxu0  ;;  %3069 = vmatprep.subr.bf16.mxu1 %v3334_v58 }
 0x668   :  { %3021 = vmatprep.mubr.bf16.mxu1 %v1227_v28  ;;  %v1195_v37 = vadd.f32 %v2488_v14, %v1194_v33 }
 0x669   :  { %v2996_v34 = vpop.f32.mrf.mxu0  ;;  %3022 = vmatmul.mubr.bf16.gmra.mxu1 %v1228_v32 }
 0x66a   :  { %v1206_v35 = vadd.f32 %v2996_v34, %v2488_v14  ;;  %3070 = vmatpush3.bf16.msra.mxu1 %v3334_v58 }
 0x66b   :  { %v1197_v36 = vpop.f32.mrf.mxu0  ;;  %3071 = vmatprep.subr.bf16.mxu1 %v3335_v62 }
 0x66c   :  { %v1198_v38 = vadd.f32 %v2488_v14, %v1197_v36  ;;  %v1230_v42 = vpack.c.bf16 %v1206_v35, %v1203_v39 }
 0x66d   :  { %v2999_v40 = vpop.f32.mrf.mxu0 }
 0x66e   :  { %v1229_v41 = vpack.c.bf16 %v1198_v38, %v1195_v37  ;;  %v1219_v56 = vadd.f32 %v2999_v40, %v2488_v14  ;;  %3072 = vmatpush3.bf16.msra.mxu1 %v3335_v62 }
 0x66f   :  { %v1210_v43 = vpop.f32.mrf.mxu0  ;;  %3073 = vmatprep.subr.bf16.mxu1 %v3336_v63 }
 0x670   :  { %3025 = vmatprep.mubr.bf16.mxu1 %v1229_v41  ;;  %v1211_v54 = vadd.f32 %v2488_v14, %v1210_v43 }
 0x671   :  { %v3000_v44 = vpop.f32.mrf.mxu0  ;;  %3026 = vmatmul.mubr.bf16.gmra.mxu1 %v1230_v42 }
 0x672   :  { %v1222_v45 = vadd.f32 %v3000_v44, %v2488_v14  ;;  %3074 = vmatpush3.bf16.msra.mxu1 %v3336_v63 }
 0x673   :  { %v1213_v53 = vpop.f32.mrf.mxu0 }
 0x674   :  { %v1214_v55 = vadd.f32 %v2488_v14, %v1213_v53  ;;  %v1232_v59 = vpack.c.bf16 %v1222_v45, %v1219_v56 }
 0x676   :  { %v1231_v57 = vpack.c.bf16 %v1214_v55, %v1211_v54 }
 0x678   :  { %3029 = vmatprep.mubr.bf16.mxu1 %v1231_v57 }
 0x679   :  { %3030 = vmatmul.mubr.bf16.gmra.mxu1 %v1232_v59 }
 0x721   :  { %v3019_v0 = vpop.f32.mrf.mxu1 }
 0x723   :  { %v1332_v1 = vpop.f32.mrf.mxu1 }
 0x725   :  { %v3020_v2 = vpop.f32.mrf.mxu1 }
 0x726   :  { %v1396_v22 = vpack.c.bf16 %v3020_v2, %v3019_v0 }
 0x727   :  { %v1335_v3 = vpop.f32.mrf.mxu1 }
 0x728   :  { %v1395_v23 = vpack.c.bf16 %v1335_v3, %v1332_v1 }
 0x729   :  { %v3023_v4 = vpop.f32.mrf.mxu1 }
 0x72b   :  { %v1348_v5 = vpop.f32.mrf.mxu1 }
 0x72d   :  { %v3024_v6 = vpop.f32.mrf.mxu1 }
 0x72e   :  { %v1398_v20 = vpack.c.bf16 %v3024_v6, %v3023_v4 }
 0x72f   :  { %v1351_v7 = vpop.f32.mrf.mxu1 }
 0x730   :  { %v1397_v21 = vpack.c.bf16 %v1351_v7, %v1348_v5 }
 0x731   :  { %v3027_v8 = vpop.f32.mrf.mxu1 }
 0x733   :  { %v1364_v10 = vpop.f32.mrf.mxu1 }
 0x735   :  { %v3028_v11 = vpop.f32.mrf.mxu1 }
 0x736   :  { %v1400_v16 = vpack.c.bf16 %v3028_v11, %v3027_v8 }
 0x737   :  { %v1367_v9 = vpop.f32.mrf.mxu1 }
 0x738   :  { %v1399_v19 = vpack.c.bf16 %v1367_v9, %v1364_v10 }
 0x739   :  { %v3031_v12 = vpop.f32.mrf.mxu1 }
 0x73b   :  { %v1380_v13 = vpop.f32.mrf.mxu1 }
 0x73d   :  { %v3032_v14 = vpop.f32.mrf.mxu1 }
 0x73e   :  { %v1402_v15 = vpack.c.bf16 %v3032_v14, %v3031_v12 }
 0x73f   :  { %v1383_v17 = vpop.f32.mrf.mxu1 }
 0x740   :  { %v1401_v18 = vpack.c.bf16 %v1383_v17, %v1380_v13  ;;  %3033 = vmatprep.subr.bf16.mxu0 %v1402_v15 }
 0x741   :  { %3034 = vmatpush3.bf16.msra.mxu0 %v1402_v15 }
 0x742   :  { %3035 = vmatprep.subr.bf16.mxu0 %v1401_v18 }
 0x745   :  { %3036 = vmatpush3.bf16.msra.mxu0 %v1401_v18 }
 0x746   :  { %3037 = vmatprep.subr.bf16.mxu0 %v1400_v16 }
 0x749   :  { %3038 = vmatpush3.bf16.msra.mxu0 %v1400_v16 }
 0x74a   :  { %3039 = vmatprep.subr.bf16.mxu0 %v1399_v19 }
 0x74d   :  { %3040 = vmatpush3.bf16.msra.mxu0 %v1399_v19 }
 0x74e   :  { %3041 = vmatprep.subr.bf16.mxu0 %v1398_v20 }
 0x751   :  { %3042 = vmatpush3.bf16.msra.mxu0 %v1398_v20 }
 0x752   :  { %3043 = vmatprep.subr.bf16.mxu0 %v1397_v21 }
 0x755   :  { %3044 = vmatpush3.bf16.msra.mxu0 %v1397_v21  ;;  %v3340_v21 = vld [vmem:[#allocation2 + $0x1b8] sm:$0xff]  }
 0x756   :  { %3045 = vmatprep.subr.bf16.mxu0 %v1396_v22 }
 0x759   :  { %3046 = vmatpush3.bf16.msra.mxu0 %v1396_v22  ;;  %v3341_v22 = vld [vmem:[#allocation2 + $0x1b0] sm:$0xff]  }
 0x75a   :  { %3047 = vmatprep.subr.bf16.mxu0 %v1395_v23 }
 0x75d   :  { %3048 = vmatpush3.bf16.msra.mxu0 %v1395_v23  ;;  %v3342_v23 = vld [vmem:[#allocation2 + $0x1a8] sm:$0xff]  }
 0x760   :  { %3050 = vmatmul.mubr.bf16.vlgmr.msra.gmra.mxu0 %v3450_v46  ;;  %v3337_v46 = vld [vmem:[#allocation2 + $0x150] sm:$0xff]  }
 0x761   :  { %3053 = vmatprep.mubr.bf16.mxu0 %v3455_v47  ;;  %3075 = vmatprep.subr.bf16.mxu1 %v3337_v46  ;;  %v3338_v47 = vld [vmem:[#allocation2 + $0x148] sm:$0xff]  }
 0x762   :  { %3076 = vmatpush3.bf16.msra.mxu1 %v3337_v46  ;;  %v3343_v46 = vld [vmem:[#allocation2 + $0x1a0] sm:$0xff]  }
 0x763   :  { %3077 = vmatprep.subr.bf16.mxu1 %v3338_v47 }
 0x766   :  { %3078 = vmatpush3.bf16.msra.mxu1 %v3338_v47  ;;  %v3344_v47 = vld [vmem:[#allocation2 + $0x198] sm:$0xff]  }
 0x768   :  { %3054 = vmatmul.mubr.bf16.gmra.mxu0 %v3462_v48  ;;  %v3339_v48 = vld [vmem:[#allocation2 + $0x140] sm:$0xff]  }
 0x769   :  { %3057 = vmatprep.mubr.bf16.mxu0 %v3467_v49  ;;  %3079 = vmatprep.subr.bf16.mxu1 %v3339_v48 }
 0x76a   :  { %3080 = vmatpush3.bf16.msra.mxu1 %v3339_v48 }
 0x76b   :  { %3129 = vmatprep.subr.bf16.mxu1 %v3340_v21 }
 0x770   :  { %3058 = vmatmul.mubr.bf16.gmra.mxu0 %v3474_v50 }
 0x771   :  { %3061 = vmatprep.mubr.bf16.mxu0 %v3479_v51  ;;  %v2506_v51 = vld [vmem:[%s3652_s3 + $0x4] ss:$0 sm:$0xff] }
 0x778   :  { %3062 = vmatmul.mubr.bf16.gmra.mxu0 %v3486_v52 }
 0x779   :  { %3113 = vmatprep.mubr.bf16.mxu0 %v3528_v24 }
 0x820   :  { %v3051_v49 = vpop.f32.mrf.mxu0 }
 0x821   :  { %v1454_v27 = vadd.f32 %v3051_v49, %v2506_v51 }
 0x822   :  { %v1445_v50 = vpop.f32.mrf.mxu0 }
 0x823   :  { %v1446_v25 = vadd.f32 %v2506_v51, %v1445_v50  ;;  %v1510_v34 = vmax.f32 %v1454_v27, 0.0 }
 0x824   :  { %v3052_v52 = vpop.f32.mrf.mxu0 }
 0x825   :  { %v1457_v26 = vadd.f32 %v3052_v52, %v2506_v51  ;;  %v1508_v32 = vmax.f32 %v1446_v25, 0.0 }
 0x826   :  { %v1448_v29 = vpop.f32.mrf.mxu0 }
 0x827   :  { %v1449_v30 = vadd.f32 %v2506_v51, %v1448_v29  ;;  %v1511_v31 = vmax.f32 %v1457_v26, 0.0 }
 0x828   :  { %v3055_v28 = vpop.f32.mrf.mxu0 }
 0x829   :  { %v1509_v33 = vmax.f32 %v1449_v30, 0.0  ;;  %v1525_v37 = vpack.c.bf16 %v1511_v31, %v1510_v34  ;;  %v1470_v41 = vadd.f32 %v3055_v28, %v2506_v51 }
 0x82a   :  { %v1461_v35 = vpop.f32.mrf.mxu0 }
 0x82b   :  { %v1524_v36 = vpack.c.bf16 %v1509_v33, %v1508_v32  ;;  %v1462_v39 = vadd.f32 %v2506_v51, %v1461_v35  ;;  %v1514_v55 = vmax.f32 %v1470_v41, 0.0 }
 0x82c   :  { %v3056_v38 = vpop.f32.mrf.mxu0 }
 0x82d   :  { %v1473_v40 = vadd.f32 %v3056_v38, %v2506_v51  ;;  %3081 = vmatprep.mubr.bf16.mxu1 %v1524_v36  ;;  %v1512_v53 = vmax.f32 %v1462_v39, 0.0 }
 0x82e   :  { %v1464_v42 = vpop.f32.mrf.mxu0  ;;  %3082 = vmatmul.mubr.bf16.vlgmr.msra.gmra.mxu1 %v1525_v37 }
 0x82f   :  { %v1465_v43 = vadd.f32 %v2506_v51, %v1464_v42  ;;  %v1515_v44 = vmax.f32 %v1473_v40, 0.0  ;;  %3130 = vmatpush3.bf16.msra.mxu1 %v3340_v21 }
 0x830   :  { %v3059_v45 = vpop.f32.mrf.mxu0  ;;  %3131 = vmatprep.subr.bf16.mxu1 %v3341_v22 }
 0x831   :  { %v1513_v54 = vmax.f32 %v1465_v43, 0.0  ;;  %v1527_v59 = vpack.c.bf16 %v1515_v44, %v1514_v55  ;;  %v1486_v62 = vadd.f32 %v3059_v45, %v2506_v51  ;;  %v3537_v44 = vld [vmem:[%s3649_s0 + $0x8] sm:$0xff]   ;;  %v3543_v45 = vld [vmem:[%s3649_s0 + $0x10] sm:$0xff]  }
 0x832   :  { %v1477_v56 = vpop.f32.mrf.mxu0  ;;  %v3561_v55 = vld [vmem:[%s3649_s0 + $0x28] sm:$0xff]  }
 0x833   :  { %v1526_v57 = vpack.c.bf16 %v1513_v54, %v1512_v53  ;;  %v1478_v61 = vadd.f32 %v2506_v51, %v1477_v56  ;;  %v1518_v5 = vmax.f32 %v1486_v62, 0.0  ;;  %3132 = vmatpush3.bf16.msra.mxu1 %v3341_v22  ;;  %v3549_v53 = vld [vmem:[%s3649_s0 + $0x18] sm:$0xff]   ;;  %v3555_v54 = vld [vmem:[%s3649_s0 + $0x20] sm:$0xff]   ;;  %v3567_v56 = vld [vmem:[%s3649_s0 + $0x30] sm:$0xff]  }
 0x834   :  { %v3060_v60 = vpop.f32.mrf.mxu0  ;;  %3133 = vmatprep.subr.bf16.mxu1 %v3342_v23 }
 0x835   :  { %v1489_v58 = vadd.f32 %v3060_v60, %v2506_v51  ;;  %3085 = vmatprep.mubr.bf16.mxu1 %v1526_v57  ;;  %v1516_v3 = vmax.f32 %v1478_v61, 0.0  ;;  %v3573_v57 = vld [vmem:[%s3649_s0 + $0x38] sm:$0xff]   ;;  %v3346_v60 = vld [vmem:[#allocation2 + $0x188] sm:$0xff]   ;;  %v3347_v61 = vld [vmem:[#allocation2 + $0x180] sm:$0xff]  }
 0x836   :  { %v1480_v63 = vpop.f32.mrf.mxu0  ;;  %3086 = vmatmul.mubr.bf16.gmra.mxu1 %v1527_v59  ;;  %v3345_v59 = vld [vmem:[#allocation2 + $0x190] sm:$0xff]  }
 0x837   :  { %v1481_v0 = vadd.f32 %v2506_v51, %v1480_v63  ;;  %v1519_v1 = vmax.f32 %v1489_v58, 0.0  ;;  %3134 = vmatpush3.bf16.msra.mxu1 %v3342_v23  ;;  %v2516_v63 = vld [vmem:[%s3652_s3 + $0x5] ss:$0 sm:$0xff] }
 0x838   :  { %v3063_v2 = vpop.f32.mrf.mxu0  ;;  %3135 = vmatprep.subr.bf16.mxu1 %v3343_v46 }
 0x839   :  { %v1517_v4 = vmax.f32 %v1481_v0, 0.0  ;;  %v1529_v8 = vpack.c.bf16 %v1519_v1, %v1518_v5  ;;  %v1502_v12 = vadd.f32 %v3063_v2, %v2506_v51 }
 0x83a   :  { %v1493_v6 = vpop.f32.mrf.mxu0 }
 0x83b   :  { %v1528_v7 = vpack.c.bf16 %v1517_v4, %v1516_v3  ;;  %v1494_v11 = vadd.f32 %v2506_v51, %v1493_v6  ;;  %v1522_v16 = vmax.f32 %v1502_v12, 0.0  ;;  %3136 = vmatpush3.bf16.msra.mxu1 %v3343_v46 }
 0x83c   :  { %v3064_v10 = vpop.f32.mrf.mxu0  ;;  %3137 = vmatprep.subr.bf16.mxu1 %v3344_v47 }
 0x83d   :  { %v1505_v9 = vadd.f32 %v3064_v10, %v2506_v51  ;;  %3089 = vmatprep.mubr.bf16.mxu1 %v1528_v7  ;;  %v1520_v17 = vmax.f32 %v1494_v11, 0.0 }
 0x83e   :  { %v1496_v13 = vpop.f32.mrf.mxu0  ;;  %3090 = vmatmul.mubr.bf16.gmra.mxu1 %v1529_v8 }
 0x83f   :  { %v1497_v14 = vadd.f32 %v2506_v51, %v1496_v13  ;;  %v1523_v15 = vmax.f32 %v1505_v9, 0.0  ;;  %3138 = vmatpush3.bf16.msra.mxu1 %v3344_v47 }
 0x840   :  { %3139 = vmatprep.subr.bf16.mxu1 %v3345_v59 }
 0x841   :  { %v1521_v18 = vmax.f32 %v1497_v14, 0.0  ;;  %v1531_v20 = vpack.c.bf16 %v1523_v15, %v1522_v16 }
 0x843   :  { %v1530_v19 = vpack.c.bf16 %v1521_v18, %v1520_v17  ;;  %3140 = vmatpush3.bf16.msra.mxu1 %v3345_v59 }
 0x844   :  { %3141 = vmatprep.subr.bf16.mxu1 %v3346_v60 }
 0x845   :  { %3093 = vmatprep.mubr.bf16.mxu1 %v1530_v19 }
 0x846   :  { %3094 = vmatmul.mubr.bf16.gmra.mxu1 %v1531_v20 }
 0x847   :  { %3142 = vmatpush3.bf16.msra.mxu1 %v3346_v60 }
 0x848   :  { %3143 = vmatprep.subr.bf16.mxu1 %v3347_v61 }
 0x84b   :  { %3144 = vmatpush3.bf16.msra.mxu1 %v3347_v61 }
 0x8ee   :  { %v3083_v48 = vpop.f32.mrf.mxu1 }
 0x8f0   :  { %v1631_v49 = vpop.f32.mrf.mxu1 }
 0x8f2   :  { %v3084_v50 = vpop.f32.mrf.mxu1 }
 0x8f3   :  { %v1695_v42 = vpack.c.bf16 %v3084_v50, %v3083_v48 }
 0x8f4   :  { %v1634_v51 = vpop.f32.mrf.mxu1 }
 0x8f5   :  { %v1694_v43 = vpack.c.bf16 %v1634_v51, %v1631_v49 }
 0x8f6   :  { %v3087_v52 = vpop.f32.mrf.mxu1 }
 0x8f8   :  { %v1647_v25 = vpop.f32.mrf.mxu1 }
 0x8fa   :  { %v3088_v26 = vpop.f32.mrf.mxu1 }
 0x8fb   :  { %v1697_v40 = vpack.c.bf16 %v3088_v26, %v3087_v52 }
 0x8fc   :  { %v1650_v27 = vpop.f32.mrf.mxu1 }
 0x8fd   :  { %v1696_v41 = vpack.c.bf16 %v1650_v27, %v1647_v25 }
 0x8fe   :  { %v3091_v29 = vpop.f32.mrf.mxu1 }
 0x900   :  { %v1663_v30 = vpop.f32.mrf.mxu1 }
 0x902   :  { %v3092_v31 = vpop.f32.mrf.mxu1 }
 0x903   :  { %v1699_v38 = vpack.c.bf16 %v3092_v31, %v3091_v29 }
 0x904   :  { %v1666_v28 = vpop.f32.mrf.mxu1 }
 0x905   :  { %v1698_v39 = vpack.c.bf16 %v1666_v28, %v1663_v30 }
 0x906   :  { %v3095_v32 = vpop.f32.mrf.mxu1 }
 0x908   :  { %v1679_v33 = vpop.f32.mrf.mxu1 }
 0x90a   :  { %v3096_v34 = vpop.f32.mrf.mxu1 }
 0x90b   :  { %v1701_v35 = vpack.c.bf16 %v3096_v34, %v3095_v32 }
 0x90c   :  { %v1682_v36 = vpop.f32.mrf.mxu1 }
 0x90d   :  { %v1700_v37 = vpack.c.bf16 %v1682_v36, %v1679_v33  ;;  %3097 = vmatprep.subr.bf16.mxu0 %v1701_v35 }
 0x90e   :  { %3098 = vmatpush3.bf16.msra.mxu0 %v1701_v35 }
 0x90f   :  { %3099 = vmatprep.subr.bf16.mxu0 %v1700_v37 }
 0x912   :  { %3100 = vmatpush3.bf16.msra.mxu0 %v1700_v37 }
 0x913   :  { %3101 = vmatprep.subr.bf16.mxu0 %v1699_v38 }
 0x916   :  { %3102 = vmatpush3.bf16.msra.mxu0 %v1699_v38 }
 0x917   :  { %3103 = vmatprep.subr.bf16.mxu0 %v1698_v39 }
 0x91a   :  { %3104 = vmatpush3.bf16.msra.mxu0 %v1698_v39 }
 0x91b   :  { %3105 = vmatprep.subr.bf16.mxu0 %v1697_v40 }
 0x91e   :  { %3106 = vmatpush3.bf16.msra.mxu0 %v1697_v40 }
 0x91f   :  { %3107 = vmatprep.subr.bf16.mxu0 %v1696_v41 }
 0x922   :  { %3108 = vmatpush3.bf16.msra.mxu0 %v1696_v41 }
 0x923   :  { %3109 = vmatprep.subr.bf16.mxu0 %v1695_v42 }
 0x926   :  { %3110 = vmatpush3.bf16.msra.mxu0 %v1695_v42 }
 0x927   :  { %3111 = vmatprep.subr.bf16.mxu0 %v1694_v43 }
 0x92a   :  { %3112 = vmatpush3.bf16.msra.mxu0 %v1694_v43 }
 0x92d   :  { %3114 = vmatmul.mubr.bf16.vlgmr.msra.gmra.mxu0 %v3537_v44 }
 0x92e   :  { %3117 = vmatprep.mubr.bf16.mxu0 %v3543_v45 }
 0x935   :  { %3118 = vmatmul.mubr.bf16.gmra.mxu0 %v3549_v53 }
 0x936   :  { %3121 = vmatprep.mubr.bf16.mxu0 %v3555_v54 }
 0x93d   :  { %3122 = vmatmul.mubr.bf16.gmra.mxu0 %v3561_v55 }
 0x93e   :  { %3125 = vmatprep.mubr.bf16.mxu0 %v3567_v56 }
 0x945   :  { %3126 = vmatmul.mubr.bf16.gmra.mxu0 %v3573_v57 }
 0x946   :  { %3177 = vmatprep.mubr.bf16.mxu0 %v3528_v24 }
 0x9ed   :  { %v3115_v58 = vpop.f32.mrf.mxu0 }
 0x9ee   :  { %v1753_v3 = vadd.f32 %v3115_v58, %v2516_v63 }
 0x9ef   :  { %v1744_v62 = vpop.f32.mrf.mxu0 }
 0x9f0   :  { %v1745_v1 = vadd.f32 %v2516_v63, %v1744_v62  ;;  %v1809_v11 = vmax.f32 %v1753_v3, 0.0  ;;  %v3348_v62 = vld [vmem:[#allocation2 + $0x1f8] sm:$0xff]  }
 0x9f1   :  { %v3116_v0 = vpop.f32.mrf.mxu0  ;;  %3193 = vmatprep.subr.bf16.mxu1 %v3348_v62 }
 0x9f2   :  { %v1756_v2 = vadd.f32 %v3116_v0, %v2516_v63  ;;  %v1807_v8 = vmax.f32 %v1745_v1, 0.0  ;;  %v3349_v0 = vld [vmem:[#allocation2 + $0x1f0] sm:$0xff]   ;;  %v3350_v1 = vld [vmem:[#allocation2 + $0x1e8] sm:$0xff]  }
 0x9f3   :  { %v1747_v4 = vpop.f32.mrf.mxu0 }
 0x9f4   :  { %v1748_v5 = vadd.f32 %v2516_v63, %v1747_v4  ;;  %v1810_v6 = vmax.f32 %v1756_v2, 0.0  ;;  %v3351_v2 = vld [vmem:[#allocation2 + $0x1e0] sm:$0xff]  }
 0x9f5   :  { %v3119_v7 = vpop.f32.mrf.mxu0 }
 0x9f6   :  { %v1808_v10 = vmax.f32 %v1748_v5, 0.0  ;;  %v1824_v13 = vpack.c.bf16 %v1810_v6, %v1809_v11  ;;  %v1769_v18 = vadd.f32 %v3119_v7, %v2516_v63 }
 0x9f7   :  { %v1760_v9 = vpop.f32.mrf.mxu0 }
 0x9f8   :  { %v1823_v12 = vpack.c.bf16 %v1808_v10, %v1807_v8  ;;  %v1761_v15 = vadd.f32 %v2516_v63, %v1760_v9  ;;  %v1813_v46 = vmax.f32 %v1769_v18, 0.0 }
 0x9f9   :  { %v3120_v14 = vpop.f32.mrf.mxu0 }
 0x9fa   :  { %v1772_v17 = vadd.f32 %v3120_v14, %v2516_v63  ;;  %3145 = vmatprep.mubr.bf16.mxu1 %v1823_v12  ;;  %v1811_v22 = vmax.f32 %v1761_v15, 0.0 }
 0x9fb   :  { %v1763_v16 = vpop.f32.mrf.mxu0  ;;  %3146 = vmatmul.mubr.bf16.vlgmr.msra.gmra.mxu1 %v1824_v13 }
 0x9fc   :  { %v1764_v19 = vadd.f32 %v2516_v63, %v1763_v16  ;;  %v1814_v20 = vmax.f32 %v1772_v17, 0.0  ;;  %3194 = vmatpush3.bf16.msra.mxu1 %v3348_v62 }
 0x9fd   :  { %v3123_v21 = vpop.f32.mrf.mxu0  ;;  %3195 = vmatprep.subr.bf16.mxu1 %v3349_v0 }
 0x9fe   :  { %v1812_v23 = vmax.f32 %v1764_v19, 0.0  ;;  %v1826_v49 = vpack.c.bf16 %v1814_v20, %v1813_v46  ;;  %v1785_v25 = vadd.f32 %v3123_v21, %v2516_v63 }
 0x9ff   :  { %v1776_v47 = vpop.f32.mrf.mxu0 }
 0xa00   :  { %v1825_v48 = vpack.c.bf16 %v1812_v23, %v1811_v22  ;;  %v1777_v51 = vadd.f32 %v2516_v63, %v1776_v47  ;;  %v1817_v32 = vmax.f32 %v1785_v25, 0.0  ;;  %3196 = vmatpush3.bf16.msra.mxu1 %v3349_v0 }
 0xa01   :  { %v3124_v50 = vpop.f32.mrf.mxu0  ;;  %3197 = vmatprep.subr.bf16.mxu1 %v3350_v1 }
 0xa02   :  { %v1788_v52 = vadd.f32 %v3124_v50, %v2516_v63  ;;  %3149 = vmatprep.mubr.bf16.mxu1 %v1825_v48  ;;  %v1815_v31 = vmax.f32 %v1777_v51, 0.0  ;;  %v3354_v50 = vld [vmem:[#allocation2 + $0x1c8] sm:$0xff]   ;;  %v3355_v51 = vld [vmem:[#allocation2 + $0x1c0] sm:$0xff]  }
 0xa03   :  { %v1779_v26 = vpop.f32.mrf.mxu0  ;;  %3150 = vmatmul.mubr.bf16.gmra.mxu1 %v1826_v49  ;;  %v3353_v49 = vld [vmem:[#allocation2 + $0x1d0] sm:$0xff]  }
 0xa04   :  { %v1780_v27 = vadd.f32 %v2516_v63, %v1779_v26  ;;  %v1818_v29 = vmax.f32 %v1788_v52, 0.0  ;;  %3198 = vmatpush3.bf16.msra.mxu1 %v3350_v1  ;;  %v2526_v26 = vld [vmem:[%s3652_s3 + $0x6] ss:$0 sm:$0xff] }
 0xa05   :  { %v3127_v30 = vpop.f32.mrf.mxu0  ;;  %3199 = vmatprep.subr.bf16.mxu1 %v3351_v2 }
 0xa06   :  { %v1816_v28 = vmax.f32 %v1780_v27, 0.0  ;;  %v1828_v35 = vpack.c.bf16 %v1818_v29, %v1817_v32  ;;  %v1801_v39 = vadd.f32 %v3127_v30, %v2516_v63 }
 0xa07   :  { %v1792_v33 = vpop.f32.mrf.mxu0 }
 0xa08   :  { %v1827_v34 = vpack.c.bf16 %v1816_v28, %v1815_v31  ;;  %v1793_v37 = vadd.f32 %v2516_v63, %v1792_v33  ;;  %v1821_v60 = vmax.f32 %v1801_v39, 0.0  ;;  %3200 = vmatpush3.bf16.msra.mxu1 %v3351_v2 }
 0xa09   :  { %v3128_v36 = vpop.f32.mrf.mxu0 }
 0xa0a   :  { %v1804_v38 = vadd.f32 %v3128_v36, %v2516_v63  ;;  %3153 = vmatprep.mubr.bf16.mxu1 %v1827_v34  ;;  %v1819_v43 = vmax.f32 %v1793_v37, 0.0 }
 0xa0b   :  { %v1795_v40 = vpop.f32.mrf.mxu0  ;;  %3154 = vmatmul.mubr.bf16.gmra.mxu1 %v1828_v35 }
 0xa0c   :  { %v1796_v41 = vadd.f32 %v2516_v63, %v1795_v40  ;;  %v1822_v42 = vmax.f32 %v1804_v38, 0.0  ;;  %v3352_v63 = vld [vmem:[#allocation2 + $0x1d8] sm:$0xff]  }
 0xa0d   :  { %3201 = vmatprep.subr.bf16.mxu1 %v3352_v63 }
 0xa0e   :  { %v1820_v59 = vmax.f32 %v1796_v41, 0.0  ;;  %v1830_v58 = vpack.c.bf16 %v1822_v42, %v1821_v60  ;;  %3202 = vmatpush3.bf16.msra.mxu1 %v3352_v63 }
 0xa0f   :  { %3203 = vmatprep.subr.bf16.mxu1 %v3353_v49 }
 0xa10   :  { %v1829_v61 = vpack.c.bf16 %v1820_v59, %v1819_v43 }
 0xa12   :  { %3157 = vmatprep.mubr.bf16.mxu1 %v1829_v61  ;;  %3204 = vmatpush3.bf16.msra.mxu1 %v3353_v49 }
 0xa13   :  { %3158 = vmatmul.mubr.bf16.gmra.mxu1 %v1830_v58  ;;  %3205 = vmatprep.subr.bf16.mxu1 %v3354_v50 }
 0xa16   :  { %3206 = vmatpush3.bf16.msra.mxu1 %v3354_v50 }
 0xa17   :  { %3207 = vmatprep.subr.bf16.mxu1 %v3355_v51 }
 0xa1a   :  { %3208 = vmatpush3.bf16.msra.mxu1 %v3355_v51 }
 0xabb   :  { %v3147_v3 = vpop.f32.mrf.mxu1 }
 0xabd   :  { %v1930_v4 = vpop.f32.mrf.mxu1 }
 0xabf   :  { %v3148_v5 = vpop.f32.mrf.mxu1 }
 0xac0   :  { %v1994_v47 = vpack.c.bf16 %v3148_v5, %v3147_v3 }
 0xac1   :  { %v1933_v6 = vpop.f32.mrf.mxu1 }
 0xac2   :  { %v1993_v48 = vpack.c.bf16 %v1933_v6, %v1930_v4 }
 0xac3   :  { %v3151_v7 = vpop.f32.mrf.mxu1 }
 0xac5   :  { %v1946_v8 = vpop.f32.mrf.mxu1 }
 0xac7   :  { %v3152_v10 = vpop.f32.mrf.mxu1 }
 0xac8   :  { %v1996_v23 = vpack.c.bf16 %v3152_v10, %v3151_v7 }
 0xac9   :  { %v1949_v11 = vpop.f32.mrf.mxu1 }
 0xaca   :  { %v1995_v46 = vpack.c.bf16 %v1949_v11, %v1946_v8 }
 0xacb   :  { %v3155_v9 = vpop.f32.mrf.mxu1 }
 0xacd   :  { %v1962_v12 = vpop.f32.mrf.mxu1 }
 0xacf   :  { %v3156_v13 = vpop.f32.mrf.mxu1 }
 0xad0   :  { %v1998_v21 = vpack.c.bf16 %v3156_v13, %v3155_v9 }
 0xad1   :  { %v1965_v14 = vpop.f32.mrf.mxu1 }
 0xad2   :  { %v1997_v22 = vpack.c.bf16 %v1965_v14, %v1962_v12 }
 0xad3   :  { %v3159_v15 = vpop.f32.mrf.mxu1 }
 0xad5   :  { %v1978_v17 = vpop.f32.mrf.mxu1 }
 0xad7   :  { %v3160_v18 = vpop.f32.mrf.mxu1 }
 0xad8   :  { %v2000_v16 = vpack.c.bf16 %v3160_v18, %v3159_v15 }
 0xad9   :  { %v1981_v19 = vpop.f32.mrf.mxu1 }
 0xada   :  { %v1999_v20 = vpack.c.bf16 %v1981_v19, %v1978_v17  ;;  %3161 = vmatprep.subr.bf16.mxu0 %v2000_v16 }
 0xadb   :  { %3162 = vmatpush3.bf16.msra.mxu0 %v2000_v16 }
 0xadc   :  { %3163 = vmatprep.subr.bf16.mxu0 %v1999_v20 }
 0xadf   :  { %3164 = vmatpush3.bf16.msra.mxu0 %v1999_v20 }
 0xae0   :  { %3165 = vmatprep.subr.bf16.mxu0 %v1998_v21 }
 0xae3   :  { %3166 = vmatpush3.bf16.msra.mxu0 %v1998_v21 }
 0xae4   :  { %3167 = vmatprep.subr.bf16.mxu0 %v1997_v22 }
 0xae7   :  { %3168 = vmatpush3.bf16.msra.mxu0 %v1997_v22 }
 0xae8   :  { %3169 = vmatprep.subr.bf16.mxu0 %v1996_v23 }
 0xaeb   :  { %3170 = vmatpush3.bf16.msra.mxu0 %v1996_v23 }
 0xaec   :  { %3171 = vmatprep.subr.bf16.mxu0 %v1995_v46 }
 0xaef   :  { %3172 = vmatpush3.bf16.msra.mxu0 %v1995_v46 }
 0xaf0   :  { %3173 = vmatprep.subr.bf16.mxu0 %v1994_v47 }
 0xaf3   :  { %3174 = vmatpush3.bf16.msra.mxu0 %v1994_v47 }
 0xaf4   :  { %3175 = vmatprep.subr.bf16.mxu0 %v1993_v48 }
 0xaf7   :  { %3176 = vmatpush3.bf16.msra.mxu0 %v1993_v48 }
 0xafa   :  { %3178 = vmatmul.mubr.bf16.vlgmr.msra.gmra.mxu0 %v3537_v44 }
 0xafb   :  { %3181 = vmatprep.mubr.bf16.mxu0 %v3543_v45 }
 0xb02   :  { %3182 = vmatmul.mubr.bf16.gmra.mxu0 %v3549_v53 }
 0xb03   :  { %3185 = vmatprep.mubr.bf16.mxu0 %v3555_v54 }
 0xb0a   :  { %3186 = vmatmul.mubr.bf16.gmra.mxu0 %v3561_v55 }
 0xb0b   :  { %3189 = vmatprep.mubr.bf16.mxu0 %v3567_v56 }
 0xb12   :  { %3190 = vmatmul.mubr.bf16.gmra.mxu0 %v3573_v57 }
 0xb13   :  { %3241 = vmatprep.mubr.bf16.mxu0 %v3528_v24 }
 0xbba   :  { %v3179_v52 = vpop.f32.mrf.mxu0 }
 0xbbb   :  { %v2052_v31 = vadd.f32 %v3179_v52, %v2526_v26 }
 0xbbc   :  { %v2043_v25 = vpop.f32.mrf.mxu0 }
 0xbbd   :  { %v2044_v29 = vadd.f32 %v2526_v26, %v2043_v25  ;;  %v2108_v36 = vmax.f32 %v2052_v31, 0.0 }
 0xbbe   :  { %v3180_v27 = vpop.f32.mrf.mxu0 }
 0xbbf   :  { %v2055_v30 = vadd.f32 %v3180_v27, %v2526_v26  ;;  %v2106_v34 = vmax.f32 %v2044_v29, 0.0 }
 0xbc0   :  { %v2046_v24 = vpop.f32.mrf.mxu0 }
 0xbc1   :  { %v2047_v28 = vadd.f32 %v2526_v26, %v2046_v24  ;;  %v2109_v32 = vmax.f32 %v2055_v30, 0.0 }
 0xbc2   :  { %v3183_v33 = vpop.f32.mrf.mxu0 }
 0xbc3   :  { %v2107_v35 = vmax.f32 %v2047_v28, 0.0  ;;  %v2123_v39 = vpack.c.bf16 %v2109_v32, %v2108_v36  ;;  %v2068_v43 = vadd.f32 %v3183_v33, %v2526_v26 }
 0xbc4   :  { %v2059_v37 = vpop.f32.mrf.mxu0 }
 0xbc5   :  { %v2122_v38 = vpack.c.bf16 %v2107_v35, %v2106_v34  ;;  %v2060_v41 = vadd.f32 %v2526_v26, %v2059_v37  ;;  %v2112_v1 = vmax.f32 %v2068_v43, 0.0 }
 0xbc6   :  { %v3184_v40 = vpop.f32.mrf.mxu0 }
 0xbc7   :  { %v2071_v42 = vadd.f32 %v3184_v40, %v2526_v26  ;;  %3209 = vmatprep.mubr.bf16.mxu1 %v2122_v38  ;;  %v2110_v62 = vmax.f32 %v2060_v41, 0.0 }
 0xbc8   :  { %v2062_v59 = vpop.f32.mrf.mxu0  ;;  %3210 = vmatmul.mubr.bf16.vlgmr.msra.gmra.mxu1 %v2123_v39 }
 0xbc9   :  { %v2063_v60 = vadd.f32 %v2526_v26, %v2062_v59  ;;  %v2113_v61 = vmax.f32 %v2071_v42, 0.0 }
 0xbca   :  { %v3187_v58 = vpop.f32.mrf.mxu0 }
 0xbcb   :  { %v2111_v0 = vmax.f32 %v2063_v60, 0.0  ;;  %v2125_v3 = vpack.c.bf16 %v2113_v61, %v2112_v1  ;;  %v2084_v7 = vadd.f32 %v3187_v58, %v2526_v26  ;;  %v2536_v61 = vld [vmem:[%s3652_s3 + $0x7] ss:$0 sm:$0xff] }
 0xbcc   :  { %v2075_v2 = vpop.f32.mrf.mxu0 }
 0xbcd   :  { %v2124_v63 = vpack.c.bf16 %v2111_v0, %v2110_v62  ;;  %v2076_v5 = vadd.f32 %v2526_v26, %v2075_v2  ;;  %v2116_v14 = vmax.f32 %v2084_v7, 0.0 }
 0xbce   :  { %v3188_v4 = vpop.f32.mrf.mxu0 }
 0xbcf   :  { %v2087_v6 = vadd.f32 %v3188_v4, %v2526_v26  ;;  %3213 = vmatprep.mubr.bf16.mxu1 %v2124_v63  ;;  %v2114_v12 = vmax.f32 %v2076_v5, 0.0 }
 0xbd0   :  { %v2078_v8 = vpop.f32.mrf.mxu0  ;;  %3214 = vmatmul.mubr.bf16.gmra.mxu1 %v2125_v3 }
 0xbd1   :  { %v2079_v10 = vadd.f32 %v2526_v26, %v2078_v8  ;;  %v2117_v11 = vmax.f32 %v2087_v6, 0.0 }
 0xbd2   :  { %v3191_v9 = vpop.f32.mrf.mxu0 }
 0xbd3   :  { %v2115_v13 = vmax.f32 %v2079_v10, 0.0  ;;  %v2127_v18 = vpack.c.bf16 %v2117_v11, %v2116_v14  ;;  %v2100_v21 = vadd.f32 %v3191_v9, %v2526_v26 }
 0xbd4   :  { %v2091_v15 = vpop.f32.mrf.mxu0 }
 0xbd5   :  { %v2126_v17 = vpack.c.bf16 %v2115_v13, %v2114_v12  ;;  %v2092_v19 = vadd.f32 %v2526_v26, %v2091_v15  ;;  %v2120_v49 = vmax.f32 %v2100_v21, 0.0 }
 0xbd6   :  { %v3192_v16 = vpop.f32.mrf.mxu0 }
 0xbd7   :  { %v2103_v20 = vadd.f32 %v3192_v16, %v2526_v26  ;;  %3217 = vmatprep.mubr.bf16.mxu1 %v2126_v17  ;;  %v2118_v47 = vmax.f32 %v2092_v19, 0.0 }
 0xbd8   :  { %v2094_v22 = vpop.f32.mrf.mxu0  ;;  %3218 = vmatmul.mubr.bf16.gmra.mxu1 %v2127_v18 }
 0xbd9   :  { %v2095_v23 = vadd.f32 %v2526_v26, %v2094_v22  ;;  %v2121_v46 = vmax.f32 %v2103_v20, 0.0 }
 0xbdb   :  { %v2119_v48 = vmax.f32 %v2095_v23, 0.0  ;;  %v2129_v51 = vpack.c.bf16 %v2121_v46, %v2120_v49 }
 0xbdd   :  { %v2128_v50 = vpack.c.bf16 %v2119_v48, %v2118_v47 }
 0xbdf   :  { %3221 = vmatprep.mubr.bf16.mxu1 %v2128_v50 }
 0xbe0   :  { %3222 = vmatmul.mubr.bf16.gmra.mxu1 %v2129_v51 }
 0xbe1   :  { %3249 = vmatprep.mubr.bf16.mxu1 %v3555_v54 }
 0xc88   :  { %v3211_v52 = vpop.f32.mrf.mxu1 }
 0xc8a   :  { %v2229_v25 = vpop.f32.mrf.mxu1 }
 0xc8c   :  { %v3212_v27 = vpop.f32.mrf.mxu1 }
 0xc8d   :  { %v2293_v59 = vpack.c.bf16 %v3212_v27, %v3211_v52 }
 0xc8e   :  { %v2232_v29 = vpop.f32.mrf.mxu1 }
 0xc8f   :  { %v2292_v60 = vpack.c.bf16 %v2232_v29, %v2229_v25 }
 0xc90   :  { %v3215_v30 = vpop.f32.mrf.mxu1 }
 0xc92   :  { %v2245_v31 = vpop.f32.mrf.mxu1 }
 0xc94   :  { %v3216_v24 = vpop.f32.mrf.mxu1 }
 0xc95   :  { %v2295_v42 = vpack.c.bf16 %v3216_v24, %v3215_v30 }
 0xc96   :  { %v2248_v28 = vpop.f32.mrf.mxu1 }
 0xc97   :  { %v2294_v43 = vpack.c.bf16 %v2248_v28, %v2245_v31 }
 0xc98   :  { %v3219_v32 = vpop.f32.mrf.mxu1 }
 0xc9a   :  { %v2261_v26 = vpop.f32.mrf.mxu1 }
 0xc9c   :  { %v3220_v33 = vpop.f32.mrf.mxu1 }
 0xc9d   :  { %v2297_v54 = vpack.c.bf16 %v3220_v33, %v3219_v32 }
 0xc9e   :  { %v2264_v34 = vpop.f32.mrf.mxu1 }
 0xc9f   :  { %v2296_v41 = vpack.c.bf16 %v2264_v34, %v2261_v26 }
 0xca0   :  { %v3223_v35 = vpop.f32.mrf.mxu1 }
 0xca2   :  { %v2277_v36 = vpop.f32.mrf.mxu1 }
 0xca4   :  { %v3224_v37 = vpop.f32.mrf.mxu1 }
 0xca5   :  { %v2299_v38 = vpack.c.bf16 %v3224_v37, %v3223_v35 }
 0xca6   :  { %v2280_v39 = vpop.f32.mrf.mxu1 }
 0xca7   :  { %v2298_v40 = vpack.c.bf16 %v2280_v39, %v2277_v36  ;;  %3225 = vmatprep.subr.bf16.mxu0 %v2299_v38  ;;  %3257 = vmatprep.subr.bf16.mxu1 %v2299_v38 }
 0xca8   :  { %3226 = vmatpush3.bf16.msra.mxu0 %v2299_v38  ;;  %3265 = vmatpush3.bf16.msra.mxu1 %v2299_v38 }
 0xca9   :  { %3227 = vmatprep.subr.bf16.mxu0 %v2298_v40  ;;  %3258 = vmatprep.subr.bf16.mxu1 %v2298_v40 }
 0xcac   :  { %3228 = vmatpush3.bf16.msra.mxu0 %v2298_v40  ;;  %3266 = vmatpush3.bf16.msra.mxu1 %v2298_v40 }
 0xcad   :  { %3229 = vmatprep.subr.bf16.mxu0 %v2297_v54  ;;  %3259 = vmatprep.subr.bf16.mxu1 %v2297_v54 }
 0xcb0   :  { %3230 = vmatpush3.bf16.msra.mxu0 %v2297_v54  ;;  %3267 = vmatpush3.bf16.msra.mxu1 %v2297_v54 }
 0xcb1   :  { %3231 = vmatprep.subr.bf16.mxu0 %v2296_v41  ;;  %3260 = vmatprep.subr.bf16.mxu1 %v2296_v41 }
 0xcb4   :  { %3232 = vmatpush3.bf16.msra.mxu0 %v2296_v41  ;;  %3268 = vmatpush3.bf16.msra.mxu1 %v2296_v41 }
 0xcb5   :  { %3233 = vmatprep.subr.bf16.mxu0 %v2295_v42  ;;  %3261 = vmatprep.subr.bf16.mxu1 %v2295_v42 }
 0xcb8   :  { %3234 = vmatpush3.bf16.msra.mxu0 %v2295_v42  ;;  %3269 = vmatpush3.bf16.msra.mxu1 %v2295_v42 }
 0xcb9   :  { %3235 = vmatprep.subr.bf16.mxu0 %v2294_v43  ;;  %3262 = vmatprep.subr.bf16.mxu1 %v2294_v43 }
 0xcbc   :  { %3236 = vmatpush3.bf16.msra.mxu0 %v2294_v43  ;;  %3270 = vmatpush3.bf16.msra.mxu1 %v2294_v43 }
 0xcbd   :  { %3237 = vmatprep.subr.bf16.mxu0 %v2293_v59  ;;  %3263 = vmatprep.subr.bf16.mxu1 %v2293_v59 }
 0xcc0   :  { %3238 = vmatpush3.bf16.msra.mxu0 %v2293_v59  ;;  %3271 = vmatpush3.bf16.msra.mxu1 %v2293_v59 }
 0xcc1   :  { %3239 = vmatprep.subr.bf16.mxu0 %v2292_v60  ;;  %3264 = vmatprep.subr.bf16.mxu1 %v2292_v60 }
 0xcc4   :  { %3240 = vmatpush3.bf16.msra.mxu0 %v2292_v60  ;;  %3272 = vmatpush3.bf16.msra.mxu1 %v2292_v60 }
 0xcc7   :  { %3242 = vmatmul.mubr.bf16.vlgmr.msra.gmra.mxu0 %v3537_v44  ;;  %3250 = vmatmul.mubr.bf16.vlgmr.msra.gmra.mxu1 %v3561_v55 }
 0xcc8   :  { %3245 = vmatprep.mubr.bf16.mxu0 %v3543_v45  ;;  %3253 = vmatprep.mubr.bf16.mxu1 %v3567_v56 }
 0xccf   :  { %3246 = vmatmul.mubr.bf16.gmra.mxu0 %v3549_v53  ;;  %3254 = vmatmul.mubr.bf16.gmra.mxu1 %v3573_v57 }
 0xd87   :  { %v3243_v58 = vpop.f32.mrf.mxu0  ;;  %v3251_v62 = vpop.f32.mrf.mxu1 }
 0xd88   :  { %v2351_v0 = vadd.f32 %v3243_v58, %v2536_v61  ;;  %v2383_v1 = vadd.f32 %v3251_v62, %v2536_v61 }
 0xd89   :  { %v2342_v2 = vpop.f32.mrf.mxu0  ;;  %v2374_v44 = vpop.f32.mrf.mxu1 }
 0xd8a   :  { %v2407_v63 = vmax.f32 %v2351_v0, 0.0  ;;  %v2415_v55 = vmax.f32 %v2383_v1, 0.0  ;;  %v2343_v3 = vadd.f32 %v2536_v61, %v2342_v2  ;;  %v2375_v45 = vadd.f32 %v2536_v61, %v2374_v44 }
 0xd8b   :  { %v3244_v4 = vpop.f32.mrf.mxu0  ;;  %v3252_v56 = vpop.f32.mrf.mxu1 }
 0xd8c   :  { %2423 = vst [vmem:[%s3653_s4 + $0x10] sm:$0xff] %v2407_v63  ;;  %2431 = vst [vmem:[%s3653_s4 + $0x50] sm:$0xff] %v2415_v55  ;;  %v2405_v53 = vmax.f32 %v2343_v3, 0.0  ;;  %v2413_v57 = vmax.f32 %v2375_v45, 0.0  ;;  %v2354_v5 = vadd.f32 %v3244_v4, %v2536_v61  ;;  %v2386_v6 = vadd.f32 %v3252_v56, %v2536_v61 }
 0xd8d   :  { %v2345_v7 = vpop.f32.mrf.mxu0  ;;  %v2377_v8 = vpop.f32.mrf.mxu1 }
 0xd8e   :  { %2421 = vst [vmem:[%s3653_s4] sm:$0xff] %v2405_v53  ;;  %2429 = vst [vmem:[%s3653_s4 + $0x40] sm:$0xff] %v2413_v57  ;;  %v2408_v10 = vmax.f32 %v2354_v5, 0.0  ;;  %v2416_v11 = vmax.f32 %v2386_v6, 0.0  ;;  %v2346_v9 = vadd.f32 %v2536_v61, %v2345_v7  ;;  %v2378_v12 = vadd.f32 %v2536_v61, %v2377_v8 }
 0xd8f   :  { %v3247_v13 = vpop.f32.mrf.mxu0  ;;  %v3255_v14 = vpop.f32.mrf.mxu1 }
 0xd90   :  { %2424 = vst [vmem:[%s3653_s4 + $0x18] sm:$0xff] %v2408_v10  ;;  %2432 = vst [vmem:[%s3653_s4 + $0x58] sm:$0xff] %v2416_v11  ;;  %v2406_v15 = vmax.f32 %v2346_v9, 0.0  ;;  %v2414_v17 = vmax.f32 %v2378_v12, 0.0  ;;  %v2367_v18 = vadd.f32 %v3247_v13, %v2536_v61  ;;  %v2399_v16 = vadd.f32 %v3255_v14, %v2536_v61 }
 0xd91   :  { %v2358_v19 = vpop.f32.mrf.mxu0  ;;  %v2390_v20 = vpop.f32.mrf.mxu1 }
 0xd92   :  { %2422 = vst [vmem:[%s3653_s4 + $0x8] sm:$0xff] %v2406_v15  ;;  %2430 = vst [vmem:[%s3653_s4 + $0x48] sm:$0xff] %v2414_v17  ;;  %v2411_v21 = vmax.f32 %v2367_v18, 0.0  ;;  %v2419_v22 = vmax.f32 %v2399_v16, 0.0  ;;  %v2359_v23 = vadd.f32 %v2536_v61, %v2358_v19  ;;  %v2391_v46 = vadd.f32 %v2536_v61, %v2390_v20 }
 0xd93   :  { %v3248_v47 = vpop.f32.mrf.mxu0  ;;  %v3256_v48 = vpop.f32.mrf.mxu1 }
 0xd94   :  { %2427 = vst [vmem:[%s3653_s4 + $0x30] sm:$0xff] %v2411_v21  ;;  %2435 = vst [vmem:[%s3653_s4 + $0x70] sm:$0xff] %v2419_v22  ;;  %v2409_v49 = vmax.f32 %v2359_v23, 0.0  ;;  %v2417_v50 = vmax.f32 %v2391_v46, 0.0  ;;  %v2370_v51 = vadd.f32 %v3248_v47, %v2536_v61  ;;  %v2402_v52 = vadd.f32 %v3256_v48, %v2536_v61 }
 0xd95   :  { %v2361_v25 = vpop.f32.mrf.mxu0  ;;  %v2393_v27 = vpop.f32.mrf.mxu1 }
 0xd96   :  { %2425 = vst [vmem:[%s3653_s4 + $0x20] sm:$0xff] %v2409_v49  ;;  %2433 = vst [vmem:[%s3653_s4 + $0x60] sm:$0xff] %v2417_v50  ;;  %v2412_v29 = vmax.f32 %v2370_v51, 0.0  ;;  %v2420_v30 = vmax.f32 %v2402_v52, 0.0  ;;  %v2362_v31 = vadd.f32 %v2536_v61, %v2361_v25  ;;  %v2394_v24 = vadd.f32 %v2536_v61, %v2393_v27 }
 0xd98   :  { %2428 = vst [vmem:[%s3653_s4 + $0x38] sm:$0xff] %v2412_v29  ;;  %2436 = vst [vmem:[%s3653_s4 + $0x78] sm:$0xff] %v2420_v30  ;;  %v2410_v28 = vmax.f32 %v2362_v31, 0.0  ;;  %v2418_v32 = vmax.f32 %v2394_v24, 0.0 }
 0xd9a   :  { %2426 = vst [vmem:[%s3653_s4 + $0x28] sm:$0xff] %v2410_v28  ;;  %2434 = vst [vmem:[%s3653_s4 + $0x68] sm:$0xff] %v2418_v32 }
 0xd9b   :  { %2441 = vsyncpa [#allocation3], 1 }

</bundles_post_ra>
